<compile_context>
chip_gen: v7x
topology: tpu7x:2x2x1
jax: 0.10.0
libtpu: 0.0.40
codegen_flags: <defaults>
</compile_context>

<pallas_src>
import math
import functools

import jax
import jax.numpy as jnp
from jax import lax
from jax.experimental import pallas as pl
from jax.experimental.pallas import tpu as pltpu


def _arc_margin_kernel(x_ref, w_ref, invn_ref, label_ref, out_ref, *,
                       s, cos_m, sin_m, th, mm, easy_margin, ls_eps,
                       out_features, tile_c):
    """One (B, tile_c) output tile: cosine -> margin -> select -> scale."""
    w = w_ref[...]                                   # (tile_c, D) streamed tile
    x = x_ref[...].astype(w.dtype)                   # (B, D) resident (cast only if bf16)

    # cosine = x @ normalize(w).T == (x @ w.T) * inv_norm   (MXU, f32 acc)
    raw = lax.dot_general(
        x, w,
        dimension_numbers=(((1,), (1,)), ((), ())),
        preferred_element_type=jnp.float32)          # (B, tile_c)
    cosine = raw * invn_ref[...]                     # (1, tile_c) broadcast

    # Exact PyTorch forward: no clamp before sqrt, no input normalization.
    sine = jnp.sqrt(1.0 - cosine * cosine)
    phi = cosine * cos_m - sine * sin_m
    if easy_margin:
        phi = jnp.where(cosine > 0.0, phi, cosine)
    else:
        phi = jnp.where(cosine > th, phi, cosine - mm)

    # one_hot.scatter_(1, label, 1): fold the tile offset into the (B, 1)
    # label (scalar subtract) instead of re-broadcasting onto the iota.
    label_local = label_ref[...] - pl.program_id(0) * tile_c      # (B, 1)
    is_target = (lax.broadcasted_iota(jnp.int32, cosine.shape, 1)
                 == label_local)                                  # (B, tile_c)

    if ls_eps > 0.0:
        one_hot = (1.0 - ls_eps) * is_target.astype(jnp.float32) + ls_eps / out_features
        out = (one_hot * phi + (1.0 - one_hot) * cosine) * s
    else:
        out = jnp.where(is_target, phi, cosine) * s
    out_ref[...] = out.astype(out_ref.dtype)


def _vmem_capacity_bytes():
    """Physical VMEM of the attached TPU; conservative fallback if unknown."""
    try:
        info = pltpu.get_tpu_info()
        cap = getattr(info, "vmem_capacity_bytes", None)
        if cap:
            return int(cap)
    except Exception:
        pass
    return 64 << 20     # assume the smallest-VMEM generation (v7x)


def _pick_tile_c(B, D, C, w_itemsize, vmem_budget_bytes,
                 target_tile_bytes=2 << 20):
    """Largest lane-dense class tile that sits at the ~2 MiB HBM knee and keeps
    the double-buffered working set inside the VMEM budget."""
    c_ceil = pl.cdiv(C, 128) * 128
    tile_c = max(128, (target_tile_bytes // (D * w_itemsize)) // 128 * 128)
    tile_c = min(tile_c, 8192, c_ceil)

    def working_set(tc):
        return (2 * tc * D * w_itemsize      # weight: double-buffered stream
                + 2 * tc * 4                 # inv_norm tile
                + 2 * B * tc * 4             # output tile
                + 2 * B * D * 4              # x (resident, 2 buffers allocated)
                + 2 * B * 4)                 # label

    while tile_c > 128 and working_set(tile_c) > vmem_budget_bytes:
        tile_c -= 128
    return tile_c


def arc_margin_product(x, weight, label, *, s=30.0, m=0.3,
                       easy_margin=False, ls_eps=0.0,
                       tile_c=None, weight_dtype=None):
    """ArcFace margin head forward.

    x:      (B, in_features) f32 embeddings (not normalized here, as in torch).
    weight: (out_features, in_features) parameter (f32; pass
            weight_dtype=jnp.bfloat16 to stream it through the kernel in bf16).
    label:  (B,) integer class labels.
    Returns (B, out_features) f32 logits.
    """
    B, D = x.shape
    C, D2 = weight.shape
    assert D == D2

    # F.normalize(weight, dim=1)'s per-row 1/max(||w||, 1e-12), computed once in
    # full precision OUTSIDE the kernel (in a real model this happens once per
    # parameter update, not per forward).
    w_f32 = weight.astype(jnp.float32)
    inv_norm = lax.rsqrt(jnp.maximum(jnp.sum(w_f32 * w_f32, axis=1), 1e-24))
    inv_norm = inv_norm.reshape(1, C)

    if weight_dtype is not None:
        weight = weight.astype(weight_dtype)   # bf16 halves the HBM weight stream
    w_itemsize = weight.dtype.itemsize

    # Generation-aware VMEM sizing: ~48 MiB scoped on v7x (64 MiB physical),
    # ~96 MiB on v5e/v6e (128 MiB physical).
    vmem_cap = _vmem_capacity_bytes()
    vmem_limit = min(int(vmem_cap * 3 // 4), 100 << 20)

    if tile_c is None:
        tile_c = _pick_tile_c(B, D, C, w_itemsize, int(vmem_limit * 0.7))
    assert tile_c % 128 == 0, "tile_c must be lane-dense (multiple of 128)"

    # Ragged last tile: no weight padding, no output slice. OOB input reads
    # only feed columns that are never written back (OOB output is masked).
    n_tiles = pl.cdiv(C, tile_c)

    cos_m = math.cos(m)
    sin_m = math.sin(m)
    th = math.cos(math.pi - m)
    mm = math.sin(math.pi - m) * m

    label2d = label.reshape(B, 1).astype(jnp.int32)

    kernel = functools.partial(
        _arc_margin_kernel,
        s=float(s), cos_m=cos_m, sin_m=sin_m, th=th, mm=mm,
        easy_margin=bool(easy_margin), ls_eps=float(ls_eps),
        out_features=C, tile_c=tile_c)

    cost = pl.CostEstimate(
        flops=2 * B * C * D + 10 * B * C,            # matmul + epilogue
        transcendentals=B * C,                       # sqrt
        bytes_accessed=(B * D * 4 + C * D * w_itemsize + C * 4
                        + B * C * 4 + B * 4))

    return pl.pallas_call(
        kernel,
        out_shape=jax.ShapeDtypeStruct((B, C), jnp.float32),
        grid_spec=pltpu.PrefetchScalarGridSpec(
            num_scalar_prefetch=0,
            grid=(n_tiles,),
            in_specs=[
                pl.BlockSpec((B, D), lambda j: (0, 0)),       # x: resident
                # Weight streamed as ~2 MiB tiles, double-buffered by Pallas.
                # (If the trace still shows exposed DMA, sweep
                #  pipeline_mode=pl.Buffered(3) here, VMEM budget permitting.)
                pl.BlockSpec((tile_c, D), lambda j: (j, 0)),
                pl.BlockSpec((1, tile_c), lambda j: (0, j)),  # inv_norm: streamed
                pl.BlockSpec((B, 1), lambda j: (0, 0)),       # label: resident
            ],
            out_specs=pl.BlockSpec((B, tile_c), lambda j: (0, j)),
        ),
        compiler_params=pltpu.CompilerParams(
            # "parallel" lets v7x's 2 TensorCores split the class tiles
            # (no-op on single-TC v5e/v6e).
            dimension_semantics=("parallel",),
            vmem_limit_bytes=vmem_limit),
        cost_estimate=cost,
    )(x, weight, inv_norm, label2d)


# ----------------------------- references ----------------------------------

def _reference_from_cosine(cosine, label, C, *, s, m, easy_margin, ls_eps):
    cos_m, sin_m = math.cos(m), math.sin(m)
    th, mm = math.cos(math.pi - m), math.sin(math.pi - m) * m
    sine = jnp.sqrt(1.0 - cosine ** 2)
    phi = cosine * cos_m - sine * sin_m
    if easy_margin:
        phi = jnp.where(cosine > 0, phi, cosine)
    else:
        phi = jnp.where(cosine > th, phi, cosine - mm)
    one_hot = jax.nn.one_hot(label, C, dtype=jnp.float32)
    if ls_eps > 0:
        one_hot = (1 - ls_eps) * one_hot + ls_eps / C
    return (one_hot * phi + (1.0 - one_hot) * cosine) * s


def _reference(x, weight, label, *, s=30.0, m=0.3, easy_margin=False, ls_eps=0.0):
    w_n = weight / jnp.maximum(
        jnp.linalg.norm(weight, axis=1, keepdims=True), 1e-12)
    cosine = x @ w_n.T
    return _reference_from_cosine(cosine, label, weight.shape[0],
                                  s=s, m=m, easy_margin=easy_margin, ls_eps=ls_eps)


if __name__ == "__main__":
    B, IN_FEATURES, OUT_FEATURES = 32, 128, 1000   # ragged: 1000 % 128 != 0

    key = jax.random.PRNGKey(0)
    kx, kw, kl = jax.random.split(key, 3)

    # Deterministic xavier_uniform_-style init for weight (out_features, in_features)
    bound = math.sqrt(6.0 / (IN_FEATURES + OUT_FEATURES))
    weight = jax.random.uniform(
        kw, (OUT_FEATURES, IN_FEATURES), jnp.float32, -bound, bound)

    # Demo embeddings: L2-normalized rows (keeps |cosine| <= 1, as in typical
    # ArcFace usage; the kernel itself does NOT normalize the input, matching
    # the PyTorch forward exactly).
    x = jax.random.normal(kx, (B, IN_FEATURES), jnp.float32)
    x = x / jnp.linalg.norm(x, axis=1, keepdims=True)

    label = jax.random.randint(kl, (B,), 0, OUT_FEATURES, dtype=jnp.int32)

    # 1) Default config, auto tile_c (single ragged class tile), f32 weight.
    out = arc_margin_product(x, weight, label, s=30.0, m=0.3,
                             easy_margin=False, ls_eps=0.0)
    out = jax.block_until_ready(out)
    ref = _reference(x, weight, label, s=30.0, m=0.3, easy_margin=False, ls_eps=0.0)
    assert out.shape == (B, OUT_FEATURES)
    assert jnp.allclose(out, ref, atol=1e-4, rtol=1e-4), "mismatch (hard margin)"

    # 2) Label smoothing + easy margin, forced small tile_c -> several grid
    #    steps with a ragged last class tile (exercises masked OOB output).
    out2 = arc_margin_product(x, weight, label, s=30.0, m=0.3,
                              easy_margin=True, ls_eps=0.1, tile_c=256)
    out2 = jax.block_until_ready(out2)
    ref2 = _reference(x, weight, label, s=30.0, m=0.3, easy_margin=True, ls_eps=0.1)
    assert jnp.allclose(out2, ref2, atol=1e-4, rtol=1e-4), "mismatch (ls_eps)"

    # 3) bf16 weight streaming (halves HBM traffic on this weight-bound kernel),
    #    compared against a reference with the same bf16 rounding applied so the
    #    check stays tight.
    out3 = arc_margin_product(x, weight, label, s=30.0, m=0.3,
                              easy_margin=False, ls_eps=0.0,
                              weight_dtype=jnp.bfloat16)
    out3 = jax.block_until_ready(out3)
    w_bf16 = weight.astype(jnp.bfloat16)
    inv_n = 1.0 / jnp.maximum(jnp.linalg.norm(weight, axis=1), 1e-12)
    cos_bf16 = jnp.dot(x.astype(jnp.bfloat16), w_bf16.T,
                       preferred_element_type=jnp.float32) * inv_n[None, :]
    ref3 = _reference_from_cosine(cos_bf16, label, OUT_FEATURES,
                                  s=30.0, m=0.3, easy_margin=False, ls_eps=0.0)
    assert jnp.allclose(out3, ref3, atol=1e-2, rtol=1e-2), "mismatch (bf16 stream)"

    print("KERNEL_OK")
</pallas_src>

<mosaic_0001>
module attributes {stable_mosaic.version = 11 : i64} {
  func.func @_arc_margin_kernel(%arg0: i32, %arg1: memref<32x128xf32, #tpu.memory_space<vmem>>, %arg2: memref<1024x128xf32, #tpu.memory_space<vmem>>, %arg3: memref<1x1024xf32, #tpu.memory_space<vmem>>, %arg4: memref<32x1xi32, #tpu.memory_space<vmem>>, %arg5: memref<32x1024xf32, #tpu.memory_space<vmem>>) attributes {dimension_semantics = [#tpu.dimension_semantics<parallel>], iteration_bounds = array<i64: 1>, scalar_prefetch = 0 : i64, scratch_operands = 0 : i64, tpu.core_type = #tpu.core_type<tc>, window_params = [{pipeline_mode = #tpu.pipeline_mode<synchronous>, transform_indices = @transform_0, window_bounds = array<i64: 32, 128>}, {transform_indices = @transform_1, window_bounds = array<i64: 1024, 128>}, {transform_indices = @transform_2, window_bounds = array<i64: 1, 1024>}, {pipeline_mode = #tpu.pipeline_mode<synchronous>, transform_indices = @transform_3, window_bounds = array<i64: 32, 1>}, {transform_indices = @transform_4, window_bounds = array<i64: 32, 1024>}]} {
    %c0 = arith.constant 0 : index
    %c0_0 = arith.constant 0 : index
    %0 = vector.load %arg2[%c0, %c0_0] : memref<1024x128xf32, #tpu.memory_space<vmem>>, vector<1024x128xf32>
    %c0_1 = arith.constant 0 : index
    %c0_2 = arith.constant 0 : index
    %1 = vector.load %arg1[%c0_1, %c0_2] : memref<32x128xf32, #tpu.memory_space<vmem>>, vector<32x128xf32>
    %cst = arith.constant dense<0.000000e+00> : vector<32x1024xf32>
    %2 = tpu.matmul %1, %0, %cst {dimension_numbers = #tpu.dot_dimension_numbers<[1], [1], [0], [0], [0, 0, 1, 0], [], []>} : vector<32x128xf32>, vector<1024x128xf32>, vector<32x1024xf32> -> vector<32x1024xf32>
    %c0_3 = arith.constant 0 : index
    %c0_4 = arith.constant 0 : index
    %3 = vector.load %arg3[%c0_3, %c0_4] : memref<1x1024xf32, #tpu.memory_space<vmem>>, vector<1x1024xf32>
    %4 = vector.broadcast %3 : vector<1x1024xf32> to vector<32x1024xf32>
    %5 = arith.mulf %2, %4 : vector<32x1024xf32>
    %6 = arith.mulf %5, %5 : vector<32x1024xf32>
    %cst_5 = arith.constant 1.000000e+00 : f32
    %7 = vector.broadcast %cst_5 : f32 to vector<32x1024xf32>
    %8 = arith.subf %7, %6 : vector<32x1024xf32>
    %9 = math.sqrt %8 : vector<32x1024xf32>
    %cst_6 = arith.constant 0.955336511 : f32
    %10 = vector.broadcast %cst_6 : f32 to vector<32x1024xf32>
    %11 = arith.mulf %5, %10 : vector<32x1024xf32>
    %cst_7 = arith.constant 0.295520216 : f32
    %12 = vector.broadcast %cst_7 : f32 to vector<32x1024xf32>
    %13 = arith.mulf %9, %12 : vector<32x1024xf32>
    %14 = arith.subf %11, %13 : vector<32x1024xf32>
    %cst_8 = arith.constant -0.955336511 : f32
    %15 = vector.broadcast %cst_8 : f32 to vector<32x1024xf32>
    %16 = arith.cmpf ogt, %5, %15 : vector<32x1024xf32>
    %cst_9 = arith.constant 0.0886560603 : f32
    %17 = vector.broadcast %cst_9 : f32 to vector<32x1024xf32>
    %18 = arith.subf %5, %17 : vector<32x1024xf32>
    %19 = arith.select %16, %14, %18 : vector<32x1024xi1>, vector<32x1024xf32>
    %c0_10 = arith.constant 0 : index
    %c0_11 = arith.constant 0 : index
    %20 = vector.load %arg4[%c0_10, %c0_11] : memref<32x1xi32, #tpu.memory_space<vmem>>, vector<32x1xi32>
    %c1024_i32 = arith.constant 1024 : i32
    %21 = arith.muli %arg0, %c1024_i32 : i32
    %22 = vector.broadcast %21 : i32 to vector<32x1xi32>
    %23 = arith.subi %20, %22 : vector<32x1xi32>
    %24 = tpu.iota {dimensions = array<i32: 1>} : vector<32x1024xi32>
    %25 = vector.broadcast %23 : vector<32x1xi32> to vector<32x1024xi32>
    %26 = arith.cmpi eq, %24, %25 : vector<32x1024xi32>
    %27 = arith.select %26, %19, %5 : vector<32x1024xi1>, vector<32x1024xf32>
    %cst_12 = arith.constant 3.000000e+01 : f32
    %28 = vector.broadcast %cst_12 : f32 to vector<32x1024xf32>
    %29 = arith.mulf %27, %28 : vector<32x1024xf32>
    %c0_13 = arith.constant 0 : index
    %c0_14 = arith.constant 0 : index
    %30 = vector.load %arg5[%c0_13, %c0_14] : memref<32x1024xf32, #tpu.memory_space<vmem>>, vector<32x1024xf32>
    tpu.vector_store %arg5[%c0_13, %c0_14], %29 {strides = array<i32>} : memref<32x1024xf32, #tpu.memory_space<vmem>>, vector<32x1024xf32>,
    return
  }
  func.func @transform_0(%arg0: i32) -> (i32, i32) {
    %c0_i32 = arith.constant 0 : i32
    %c0_i32_0 = arith.constant 0 : i32
    %c0_i32_1 = arith.constant 0 : i32
    return %c0_i32, %c0_i32_0 : i32, i32
  }
  func.func @transform_1(%arg0: i32) -> (i32, i32) {
    %c0_i32 = arith.constant 0 : i32
    %c0_i32_0 = arith.constant 0 : i32
    return %arg0, %c0_i32 : i32, i32
  }
  func.func @transform_2(%arg0: i32) -> (i32, i32) {
    %c0_i32 = arith.constant 0 : i32
    %c0_i32_0 = arith.constant 0 : i32
    return %c0_i32, %arg0 : i32, i32
  }
  func.func @transform_3(%arg0: i32) -> (i32, i32) {
    %c0_i32 = arith.constant 0 : i32
    %c0_i32_0 = arith.constant 0 : i32
    %c0_i32_1 = arith.constant 0 : i32
    return %c0_i32, %c0_i32_0 : i32, i32
  }
  func.func @transform_4(%arg0: i32) -> (i32, i32) {
    %c0_i32 = arith.constant 0 : i32
    %c0_i32_0 = arith.constant 0 : i32
    return %c0_i32, %arg0 : i32, i32
  }
}

</mosaic_0001>

<bundles_post_ra>
// kernel: tpu_custom_call.1
= control target key start
LH: loop header
LB: loop body
LE: loop exit
PB: predicated region body
PF: predicated region fallthrough
CT: control target
= control target key end

     0   :  { %9 = vsyncpa [#allocation3], 0  ;;  %s2816_s0 = inlined_call_operand.vmem [shape: f32[32,128], index: 0, kind: input, shape index: {}]   ;;  %s2817_s1 = inlined_call_operand.hbm [shape: f32[1000,128], index: 1, kind: input, shape index: {}]   ;;  %s2818_s2 = inlined_call_operand.vmem [shape: f32[1,1000], index: 2, kind: input, shape index: {}]   ;;  %s2819_s3 = inlined_call_operand.vmem [shape: s32[32,1], index: 3, kind: input, shape index: {}]   ;;  %s2820_s4 = inlined_call_operand.hbm [shape: f32[32,1000], index: 4, kind: output, shape index: {}]  }
   0x1   :  { %10 = vsyncpa [#allocation4], 0 }
   0x2   :  { %17 = vsyncadd [#allocation3], 384  ;;  %s1691_s15 = smov [#allocation2]   ;;  %s1643_s19 = scalar_lea.hbm %s2817_s1, 16000 }
   0x3   :  { %s18_s16 = sshll.u32 %s1691_s15, 4  ;;  %p1644_p0 = scmp.ne.s32.totalorder %s2817_s1, %s1643_s19  ;;  %s19_s16 = int_to_ptr.vmem [resolvable:$true] %s18_s16 }
   0x4   :  { %p1647_p1 = scmp.lt.u32.totalorder %s1643_s19, %s2817_s1 }
   0x6   :  { %p1649_p2 = pnand %p1647_p1, %p1644_p0 }
   0x8   :  { %1652 = shalt.err (!%p1649_p2)
}
   0x9   :  { %s1653_s24 = scalar_lea.vmem %s19_s16, 16000  ;;  %s1657_s25 = scalar_lea.vmem %s19_s16, 16384 }
   0xa   :  { %p1654_p3 = scmp.ne.s32.totalorder %s19_s16, %s1653_s24  ;;  %p1658_p4 = scmp.lt.s32.totalorder %s19_s16, %s19_s16 }
   0xb   :  { %p1659_p5 = scmp.lt.s32.totalorder %s1657_s25, %s1653_s24 }
   0xd   :  { %p1660_p6 = por %p1659_p5, %p1658_p4 }
   0xf   :  { %p1661_p7 = pnand %p1660_p6, %p1654_p3 }
  0x11   :  { %1664 = shalt.err (!%p1661_p7)
}
  0x12   :  { %s1692_s26 = smov 128   ;;  %s1693_s27 = smov 8  }
  0x13   :  { %24 = dma.hbm_to_vmem [thread:$0]  %s2817_s1, 16000, %s19_s16, [#allocation3], %s1692_s26, %s1692_s26, %s1693_s27  }
  0x14   :  { %1687 = dma.done.wait [#allocation3], 16384  }
  0x15   :  { %1688 = vsyncadd [#allocation3], 4294950912  ;;  %v48_v0 = vld [vmem:[#allocation2 + $0x80] sm:$0xff]  ;;  %v49_v1 = vld [vmem:[#allocation2 + $0x88] sm:$0xff]  ;;  %v1694_v41 = vmov 0  }
  0x16   :  { %v80_v2 = vld [vmem:[#allocation2 + $0x180] sm:$0xff]  ;;  %v1442_v3 = vpack.c.bf16 %v49_v1, %v48_v0  ;;  %v81_v4 = vld [vmem:[#allocation2 + $0x188] sm:$0xff]  ;;  %v50_v11 = vld [vmem:[#allocation2 + $0x90] sm:$0xff]  ;;  %1577 = vset.pattern.permute.xlu0 %v1694_v41  ;;  %1578 = vset.pattern.permute.xlu1 %v1694_v41 }
  0x17   :  { %v32_v5 = vld [vmem:[#allocation2] sm:$0xff]  ;;  %v33_v6 = vld [vmem:[#allocation2 + $0x8] sm:$0xff]  ;;  %v1474_v7 = vpack.c.bf16 %v81_v4, %v80_v2  ;;  %v51_v13 = vld [vmem:[#allocation2 + $0x98] sm:$0xff] }
  0x18   :  { %v1444_v8 = vpack.c.bf16 %v33_v6, %v32_v5  ;;  %v64_v9 = vld [vmem:[#allocation2 + $0x100] sm:$0xff]  ;;  %v65_v10 = vld [vmem:[#allocation2 + $0x108] sm:$0xff]  ;;  %1443 = vmatprep.subr.bf16.mxu0 %v1442_v3  ;;  %v82_v14 = vld [vmem:[#allocation2 + $0x190] sm:$0xff]  ;;  %v1446_v16 = vpack.c.bf16 %v51_v13, %v50_v11 }
  0x19   :  { %v1476_v12 = vpack.c.bf16 %v65_v10, %v64_v9  ;;  %v83_v15 = vld [vmem:[#allocation2 + $0x198] sm:$0xff]  ;;  %1475 = vmatprep.subr.bf16.mxu1 %v1474_v7  ;;  %v34_v18 = vld [vmem:[#allocation2 + $0x10] sm:$0xff]  ;;  %v52_v22 = vld [vmem:[#allocation2 + $0xa0] sm:$0xff] }
  0x1a   :  { %1445 = vmatpush3.bf16.xpose.msra.mxu0 %v1444_v8  ;;  %v1478_v17 = vpack.c.bf16 %v83_v15, %v82_v14  ;;  %v35_v19 = vld [vmem:[#allocation2 + $0x18] sm:$0xff]  ;;  %v66_v20 = vld [vmem:[#allocation2 + $0x110] sm:$0xff]  ;;  %v53_v23 = vld [vmem:[#allocation2 + $0xa8] sm:$0xff] }
  0x1b   :  { %1477 = vmatpush3.bf16.xpose.msra.mxu1 %v1476_v12  ;;  %1447 = vmatprep.subr.bf16.mxu0 %v1446_v16  ;;  %v67_v21 = vld [vmem:[#allocation2 + $0x118] sm:$0xff]  ;;  %v84_v24 = vld [vmem:[#allocation2 + $0x1a0] sm:$0xff]  ;;  %v85_v25 = vld [vmem:[#allocation2 + $0x1a8] sm:$0xff]  ;;  %v1448_v26 = vpack.c.bf16 %v35_v19, %v34_v18  ;;  %v1450_v28 = vpack.c.bf16 %v53_v23, %v52_v22 }
  0x1c   :  { %1479 = vmatprep.subr.bf16.mxu1 %v1478_v17  ;;  %v1480_v27 = vpack.c.bf16 %v67_v21, %v66_v20  ;;  %v1482_v29 = vpack.c.bf16 %v85_v25, %v84_v24  ;;  %v36_v30 = vld [vmem:[#allocation2 + $0x20] sm:$0xff]  ;;  %v37_v31 = vld [vmem:[#allocation2 + $0x28] sm:$0xff]  ;;  %v54_v34 = vld [vmem:[#allocation2 + $0xb0] sm:$0xff] }
  0x1d   :  { %v68_v32 = vld [vmem:[#allocation2 + $0x120] sm:$0xff]  ;;  %v69_v33 = vld [vmem:[#allocation2 + $0x128] sm:$0xff]  ;;  %v55_v35 = vld [vmem:[#allocation2 + $0xb8] sm:$0xff]  ;;  %v1452_v38 = vpack.c.bf16 %v37_v31, %v36_v30 }
  0x1e   :  { %v86_v36 = vld [vmem:[#allocation2 + $0x1b0] sm:$0xff]  ;;  %v87_v37 = vld [vmem:[#allocation2 + $0x1b8] sm:$0xff]  ;;  %v1484_v39 = vpack.c.bf16 %v69_v33, %v68_v32  ;;  %v1454_v40 = vpack.c.bf16 %v55_v35, %v54_v34  ;;  %v1738_v46 = vld [vmem:[%s2816_s0] sm:$0xff] }
  0x1f   :  { %v1486_v42 = vpack.c.bf16 %v87_v37, %v86_v36  ;;  %v38_v43 = vld [vmem:[#allocation2 + $0x30] sm:$0xff]  ;;  %v39_v44 = vld [vmem:[#allocation2 + $0x38] sm:$0xff]  ;;  %v56_v48 = vld [vmem:[#allocation2 + $0xc0] sm:$0xff]  ;;  %1314 = vmatprep.mubr.f32.mxu0 %v1738_v46  ;;  %1354 = vmatprep.mubr.f32.mxu1 %v1738_v46 }
  0x20   :  { %v70_v45 = vld [vmem:[#allocation2 + $0x130] sm:$0xff]  ;;  %v71_v47 = vld [vmem:[#allocation2 + $0x138] sm:$0xff]  ;;  %v57_v49 = vld [vmem:[#allocation2 + $0xc8] sm:$0xff]  ;;  %v1456_v52 = vpack.c.bf16 %v39_v44, %v38_v43 }
  0x21   :  { %v88_v50 = vld [vmem:[#allocation2 + $0x1c0] sm:$0xff]  ;;  %v89_v51 = vld [vmem:[#allocation2 + $0x1c8] sm:$0xff]  ;;  %v1488_v53 = vpack.c.bf16 %v71_v47, %v70_v45  ;;  %v1458_v54 = vpack.c.bf16 %v57_v49, %v56_v48  ;;  %v58_v60 = vld [vmem:[#allocation2 + $0xd0] sm:$0xff] }
  0x22   :  { %1449 = vmatpush3.bf16.xpose.msra.mxu0 %v1448_v26  ;;  %v1490_v55 = vpack.c.bf16 %v89_v51, %v88_v50  ;;  %v40_v56 = vld [vmem:[#allocation2 + $0x40] sm:$0xff]  ;;  %v41_v57 = vld [vmem:[#allocation2 + $0x48] sm:$0xff]  ;;  %v59_v61 = vld [vmem:[#allocation2 + $0xd8] sm:$0xff] }
  0x23   :  { %1481 = vmatpush3.bf16.xpose.msra.mxu1 %v1480_v27  ;;  %1451 = vmatprep.subr.bf16.mxu0 %v1450_v28  ;;  %v72_v58 = vld [vmem:[#allocation2 + $0x140] sm:$0xff]  ;;  %v73_v59 = vld [vmem:[#allocation2 + $0x148] sm:$0xff]  ;;  %v90_v62 = vld [vmem:[#allocation2 + $0x1d0] sm:$0xff]  ;;  %v1460_v0 = vpack.c.bf16 %v41_v57, %v40_v56  ;;  %v1462_v2 = vpack.c.bf16 %v59_v61, %v58_v60 }
  0x24   :  { %1483 = vmatprep.subr.bf16.mxu1 %v1482_v29  ;;  %v91_v63 = vld [vmem:[#allocation2 + $0x1d8] sm:$0xff]  ;;  %v1492_v1 = vpack.c.bf16 %v73_v59, %v72_v58  ;;  %v42_v4 = vld [vmem:[#allocation2 + $0x50] sm:$0xff]  ;;  %v60_v8 = vld [vmem:[#allocation2 + $0xe0] sm:$0xff] }
  0x25   :  { %v1494_v3 = vpack.c.bf16 %v91_v63, %v90_v62  ;;  %v43_v5 = vld [vmem:[#allocation2 + $0x58] sm:$0xff]  ;;  %v74_v6 = vld [vmem:[#allocation2 + $0x150] sm:$0xff]  ;;  %v61_v9 = vld [vmem:[#allocation2 + $0xe8] sm:$0xff] }
  0x26   :  { %v75_v7 = vld [vmem:[#allocation2 + $0x158] sm:$0xff]  ;;  %v92_v10 = vld [vmem:[#allocation2 + $0x1e0] sm:$0xff]  ;;  %v93_v11 = vld [vmem:[#allocation2 + $0x1e8] sm:$0xff]  ;;  %v1464_v12 = vpack.c.bf16 %v43_v5, %v42_v4  ;;  %v1466_v14 = vpack.c.bf16 %v61_v9, %v60_v8 }
  0x27   :  { %v1496_v13 = vpack.c.bf16 %v75_v7, %v74_v6  ;;  %v1498_v15 = vpack.c.bf16 %v93_v11, %v92_v10  ;;  %v1074_v16 = vld [vmem:[%s2819_s3] sm:$0xff]  ;;  %v1076_v17 = vld [vmem:[%s2819_s3 + $0x10] sm:$0xff]  ;;  %v45_v19 = vld [vmem:[#allocation2 + $0x68] sm:$0xff] }
  0x28   :  { %v44_v18 = vld [vmem:[#allocation2 + $0x60] sm:$0xff]  ;;  %v77_v21 = vld [vmem:[#allocation2 + $0x168] sm:$0xff]  ;;  %v62_v22 = vld [vmem:[#allocation2 + $0xf0] sm:$0xff]  ;;  %1094 = vperm.xlu0 %1577, %v1074_v16   ;;  %1100 = vperm.xlu1 %1578, %v1076_v17  }
  0x29   :  { %v76_v20 = vld [vmem:[#allocation2 + $0x160] sm:$0xff]  ;;  %v63_v23 = vld [vmem:[#allocation2 + $0xf8] sm:$0xff]  ;;  %v94_v24 = vld [vmem:[#allocation2 + $0x1f0] sm:$0xff]  ;;  %v1468_v27 = vpack.c.bf16 %v45_v19, %v44_v18 }
  0x2a   :  { %1453 = vmatpush3.bf16.xpose.msra.mxu0 %v1452_v38  ;;  %v95_v25 = vld [vmem:[#allocation2 + $0x1f8] sm:$0xff]  ;;  %v1075_v26 = vld [vmem:[%s2819_s3 + $0x8] sm:$0xff]  ;;  %v1500_v29 = vpack.c.bf16 %v77_v21, %v76_v20  ;;  %v1470_v30 = vpack.c.bf16 %v63_v23, %v62_v22  ;;  %v46_v32 = vld [vmem:[#allocation2 + $0x70] sm:$0xff] }
  0x2b   :  { %1485 = vmatpush3.bf16.xpose.msra.mxu1 %v1484_v39  ;;  %1455 = vmatprep.subr.bf16.mxu0 %v1454_v40  ;;  %v1077_v28 = vld [vmem:[%s2819_s3 + $0x18] sm:$0xff]  ;;  %v1502_v31 = vpack.c.bf16 %v95_v25, %v94_v24  ;;  %v78_v34 = vld [vmem:[#allocation2 + $0x170] sm:$0xff]  ;;  %v112_v36 = vld [vmem:[#allocation2 + $0x280] sm:$0xff] }
  0x2c   :  { %1487 = vmatprep.subr.bf16.mxu1 %v1486_v42  ;;  %1097 = vperm.xlu0 %1577, %v1075_v26   ;;  %v47_v33 = vld [vmem:[#allocation2 + $0x78] sm:$0xff]  ;;  %v113_v37 = vld [vmem:[#allocation2 + $0x288] sm:$0xff]  ;;  %v144_v38 = vld [vmem:[#allocation2 + $0x380] sm:$0xff] }
  0x2d   :  { %1103 = vperm.xlu1 %1578, %v1077_v28   ;;  %v79_v35 = vld [vmem:[#allocation2 + $0x178] sm:$0xff]  ;;  %v145_v39 = vld [vmem:[#allocation2 + $0x388] sm:$0xff]  ;;  %v1472_v40 = vpack.c.bf16 %v47_v33, %v46_v32  ;;  %v1506_v42 = vpack.c.bf16 %v113_v37, %v112_v36  ;;  %v96_v44 = vld [vmem:[#allocation2 + $0x200] sm:$0xff] }
  0x2e   :  { %v1504_v41 = vpack.c.bf16 %v79_v35, %v78_v34  ;;  %v1538_v43 = vpack.c.bf16 %v145_v39, %v144_v38  ;;  %v97_v45 = vld [vmem:[#allocation2 + $0x208] sm:$0xff]  ;;  %v128_v47 = vld [vmem:[#allocation2 + $0x300] sm:$0xff]  ;;  %v114_v49 = vld [vmem:[#allocation2 + $0x290] sm:$0xff] }
  0x2f   :  { %v129_v48 = vld [vmem:[#allocation2 + $0x308] sm:$0xff]  ;;  %v115_v50 = vld [vmem:[#allocation2 + $0x298] sm:$0xff]  ;;  %v146_v51 = vld [vmem:[#allocation2 + $0x390] sm:$0xff] }
  0x30   :  { %v1758_v57 = vld [vmem:[%s2816_s0 + $0x8] sm:$0xff]  ;;  %v98_v58 = vld [vmem:[#allocation2 + $0x210] sm:$0xff]  ;;  %v99_v59 = vld [vmem:[#allocation2 + $0x218] sm:$0xff] }
  0x31   :  { %v130_v60 = vld [vmem:[#allocation2 + $0x310] sm:$0xff]  ;;  %v131_v62 = vld [vmem:[#allocation2 + $0x318] sm:$0xff]  ;;  %v116_v63 = vld [vmem:[#allocation2 + $0x2a0] sm:$0xff] }
  0x32   :  { %1457 = vmatpush3.bf16.xpose.msra.mxu0 %v1456_v52  ;;  %v147_v52 = vld [vmem:[#allocation2 + $0x398] sm:$0xff]  ;;  %v1764_v61 = vld [vmem:[%s2816_s0 + $0x10] sm:$0xff]  ;;  %v1544_v4 = vpack.c.bf16 %v131_v62, %v130_v60  ;;  %v100_v8 = vld [vmem:[#allocation2 + $0x220] sm:$0xff] }
  0x33   :  { %1489 = vmatpush3.bf16.xpose.msra.mxu1 %v1488_v53  ;;  %1459 = vmatprep.subr.bf16.mxu0 %v1458_v54  ;;  %v1508_v53 = vpack.c.bf16 %v97_v45, %v96_v44  ;;  %v1540_v54 = vpack.c.bf16 %v129_v48, %v128_v47  ;;  %v1542_v56 = vpack.c.bf16 %v147_v52, %v146_v51  ;;  %v1776_v7 = vld [vmem:[%s2816_s0 + $0x18] sm:$0xff]  ;;  %v101_v9 = vld [vmem:[#allocation2 + $0x228] sm:$0xff]  ;;  %v132_v10 = vld [vmem:[#allocation2 + $0x320] sm:$0xff] }
  0x34   :  { %1491 = vmatprep.subr.bf16.mxu1 %v1490_v55  ;;  %v1510_v55 = vpack.c.bf16 %v115_v50, %v114_v49  ;;  %v133_v11 = vld [vmem:[#allocation2 + $0x328] sm:$0xff]  ;;  %v1516_v16 = vpack.c.bf16 %v101_v9, %v100_v8  ;;  %v102_v20 = vld [vmem:[#allocation2 + $0x230] sm:$0xff]  ;;  %v103_v21 = vld [vmem:[#allocation2 + $0x238] sm:$0xff] }
  0x35   :  { %v1548_v17 = vpack.c.bf16 %v133_v11, %v132_v10  ;;  %v134_v22 = vld [vmem:[#allocation2 + $0x330] sm:$0xff]  ;;  %v135_v23 = vld [vmem:[#allocation2 + $0x338] sm:$0xff]  ;;  %v120_v24 = vld [vmem:[#allocation2 + $0x2c0] sm:$0xff]  ;;  %v1520_v28 = vpack.c.bf16 %v103_v21, %v102_v20 }
  0x36   :  { %v121_v25 = vld [vmem:[#allocation2 + $0x2c8] sm:$0xff]  ;;  %v152_v26 = vld [vmem:[#allocation2 + $0x3c0] sm:$0xff]  ;;  %v122_v36 = vld [vmem:[#allocation2 + $0x2d0] sm:$0xff] }
  0x37   :  { %v104_v32 = vld [vmem:[#allocation2 + $0x240] sm:$0xff]  ;;  %v105_v33 = vld [vmem:[#allocation2 + $0x248] sm:$0xff]  ;;  %v123_v37 = vld [vmem:[#allocation2 + $0x2d8] sm:$0xff] }
  0x38   :  { %v136_v34 = vld [vmem:[#allocation2 + $0x340] sm:$0xff]  ;;  %v137_v35 = vld [vmem:[#allocation2 + $0x348] sm:$0xff]  ;;  %v154_v38 = vld [vmem:[#allocation2 + $0x3d0] sm:$0xff] }
  0x39   :  { %v155_v39 = vld [vmem:[#allocation2 + $0x3d8] sm:$0xff]  ;;  %v106_v44 = vld [vmem:[#allocation2 + $0x250] sm:$0xff]  ;;  %v124_v49 = vld [vmem:[#allocation2 + $0x2e0] sm:$0xff] }
  0x3a   :  { %1461 = vmatpush3.bf16.xpose.msra.mxu0 %v1460_v0  ;;  %v117_v0 = vld [vmem:[#allocation2 + $0x2a8] sm:$0xff]  ;;  %v107_v45 = vld [vmem:[#allocation2 + $0x258] sm:$0xff]  ;;  %v138_v47 = vld [vmem:[#allocation2 + $0x350] sm:$0xff] }
  0x3b   :  { %1493 = vmatpush3.bf16.xpose.msra.mxu1 %v1492_v1  ;;  %1463 = vmatprep.subr.bf16.mxu0 %v1462_v2  ;;  %v148_v1 = vld [vmem:[#allocation2 + $0x3a0] sm:$0xff]  ;;  %v149_v2 = vld [vmem:[#allocation2 + $0x3a8] sm:$0xff]  ;;  %v1514_v5 = vpack.c.bf16 %v117_v0, %v116_v63  ;;  %v139_v48 = vld [vmem:[#allocation2 + $0x358] sm:$0xff] }
  0x3c   :  { %1495 = vmatprep.subr.bf16.mxu1 %v1494_v3  ;;  %v1512_v3 = vpack.c.bf16 %v99_v59, %v98_v58  ;;  %v1546_v6 = vpack.c.bf16 %v149_v2, %v148_v1  ;;  %v125_v50 = vld [vmem:[#allocation2 + $0x2e8] sm:$0xff]  ;;  %v156_v51 = vld [vmem:[#allocation2 + $0x3e0] sm:$0xff]  ;;  %v126_v63 = vld [vmem:[#allocation2 + $0x2f0] sm:$0xff] }
  0x3d   :  { %v157_v52 = vld [vmem:[#allocation2 + $0x3e8] sm:$0xff]  ;;  %v108_v58 = vld [vmem:[#allocation2 + $0x260] sm:$0xff]  ;;  %v127_v0 = vld [vmem:[#allocation2 + $0x2f8] sm:$0xff] }
  0x3e   :  { %v109_v59 = vld [vmem:[#allocation2 + $0x268] sm:$0xff]  ;;  %v140_v60 = vld [vmem:[#allocation2 + $0x360] sm:$0xff]  ;;  %v158_v1 = vld [vmem:[#allocation2 + $0x3f0] sm:$0xff] }
  0x3f   :  { %v141_v62 = vld [vmem:[#allocation2 + $0x368] sm:$0xff]  ;;  %v159_v2 = vld [vmem:[#allocation2 + $0x3f8] sm:$0xff]  ;;  %v110_v8 = vld [vmem:[#allocation2 + $0x270] sm:$0xff] }
  0x40   :  { %v111_v9 = vld [vmem:[#allocation2 + $0x278] sm:$0xff]  ;;  %v142_v10 = vld [vmem:[#allocation2 + $0x370] sm:$0xff] }
  0x41   :  { %v143_v11 = vld [vmem:[#allocation2 + $0x378] sm:$0xff] }
  0x42   :  { %1465 = vmatpush3.bf16.xpose.msra.mxu0 %v1464_v12  ;;  %v118_v12 = vld [vmem:[#allocation2 + $0x2b0] sm:$0xff] }
  0x43   :  { %1497 = vmatpush3.bf16.xpose.msra.mxu1 %v1496_v13  ;;  %1467 = vmatprep.subr.bf16.mxu0 %v1466_v14  ;;  %v119_v13 = vld [vmem:[#allocation2 + $0x2b8] sm:$0xff]  ;;  %v150_v14 = vld [vmem:[#allocation2 + $0x3b0] sm:$0xff] }
  0x44   :  { %1499 = vmatprep.subr.bf16.mxu1 %v1498_v15  ;;  %v151_v15 = vld [vmem:[#allocation2 + $0x3b8] sm:$0xff]  ;;  %v1518_v18 = vpack.c.bf16 %v119_v13, %v118_v12  ;;  %v1536_v12 = vpack.c.bf16 %v111_v9, %v110_v8  ;;  %v1568_v13 = vpack.c.bf16 %v143_v11, %v142_v10 }
  0x45   :  { %v1550_v19 = vpack.c.bf16 %v151_v15, %v150_v14  ;;  %v1805_v15 = vld [vmem:[%s2818_s2] sm:$0xff]  ;;  %s1695_s2 = smov [#allocation5]  }
  0x46   :  { %s1238_s19 = sshll.u32 %s1695_s2, 4  ;;  %s1239_s19 = int_to_ptr.vmem [resolvable:$true] %s1238_s19 }
  0x47   :  { %s1665_s20 = scalar_lea.vmem %s1239_s19, 4096  ;;  %p1670_p9 = scmp.lt.s32.totalorder %s1239_s19, %s1239_s19 }
  0x48   :  { %p1666_p8 = scmp.ne.s32.totalorder %s1239_s19, %s1665_s20  ;;  %p1671_p10 = scmp.lt.s32.totalorder %s1665_s20, %s1665_s20 }
  0x4a   :  { %1469 = vmatpush3.bf16.xpose.msra.mxu0 %v1468_v27  ;;  %v153_v27 = vld [vmem:[#allocation2 + $0x3c8] sm:$0xff]  ;;  %p1672_p11 = por %p1671_p10, %p1670_p9 }
  0x4b   :  { %1501 = vmatpush3.bf16.xpose.msra.mxu1 %v1500_v29  ;;  %1471 = vmatprep.subr.bf16.mxu0 %v1470_v30  ;;  %v1552_v29 = vpack.c.bf16 %v135_v23, %v134_v22  ;;  %v1522_v30 = vpack.c.bf16 %v121_v25, %v120_v24 }
  0x4c   :  { %1503 = vmatprep.subr.bf16.mxu1 %v1502_v31  ;;  %v1554_v31 = vpack.c.bf16 %v153_v27, %v152_v26  ;;  %p1673_p12 = pnand %p1672_p11, %p1666_p8 }
  0x52   :  { %1473 = vmatpush3.bf16.xpose.msra.mxu0 %v1472_v40  ;;  %v1524_v40 = vpack.c.bf16 %v105_v33, %v104_v32 }
  0x53   :  { %1505 = vmatpush3.bf16.xpose.msra.mxu1 %v1504_v41  ;;  %1507 = vmatprep.subr.bf16.mxu0 %v1506_v42  ;;  %v1556_v41 = vpack.c.bf16 %v137_v35, %v136_v34  ;;  %v1526_v42 = vpack.c.bf16 %v123_v37, %v122_v36 }
  0x54   :  { %1539 = vmatprep.subr.bf16.mxu1 %v1538_v43  ;;  %v1558_v43 = vpack.c.bf16 %v155_v39, %v154_v38 }
  0x59   :  { %1315 = vmatmul.mubr.f32.vlgmr.msra.gmra.mrb[0].mxu0 %v1738_v46 }
  0x5a   :  { %1355 = vmatmul.mubr.f32.vlgmr.msra.gmra.mrb[0].mxu1 %v1738_v46  ;;  %1509 = vmatpush3.bf16.xpose.msra.mxu0 %v1508_v53  ;;  %v1528_v53 = vpack.c.bf16 %v107_v45, %v106_v44 }
  0x5b   :  { %1541 = vmatpush3.bf16.xpose.msra.mxu1 %v1540_v54  ;;  %1511 = vmatprep.subr.bf16.mxu0 %v1510_v55  ;;  %v1560_v54 = vpack.c.bf16 %v139_v48, %v138_v47  ;;  %v1530_v55 = vpack.c.bf16 %v125_v50, %v124_v49 }
  0x5c   :  { %1543 = vmatprep.subr.bf16.mxu1 %v1542_v56  ;;  %1316 = vmatprep.mubr.f32.mxu0 %v1758_v57  ;;  %v1562_v56 = vpack.c.bf16 %v157_v52, %v156_v51 }
  0x5d   :  { %1356 = vmatprep.mubr.f32.mxu1 %v1758_v57  ;;  %1317 = vmatmul.mubr.f32.gmra.mrb[2].mxu0 %v1758_v57 }
  0x5e   :  { %1357 = vmatmul.mubr.f32.gmra.mrb[2].mxu1 %v1758_v57  ;;  %1318 = vmatprep.mubr.f32.mxu0 %v1764_v61 }
  0x5f   :  { %1358 = vmatprep.mubr.f32.mxu1 %v1764_v61 }
  0x61   :  { %1319 = vmatmul.mubr.f32.gmra.mrb[4].mxu0 %v1764_v61 }
  0x62   :  { %1513 = vmatpush3.bf16.xpose.msra.mxu0 %v1512_v3  ;;  %1359 = vmatmul.mubr.f32.gmra.mrb[4].mxu1 %v1764_v61  ;;  %v1532_v3 = vpack.c.bf16 %v109_v59, %v108_v58 }
  0x63   :  { %1545 = vmatpush3.bf16.xpose.msra.mxu1 %v1544_v4  ;;  %1515 = vmatprep.subr.bf16.mxu0 %v1514_v5  ;;  %v1564_v4 = vpack.c.bf16 %v141_v62, %v140_v60  ;;  %v1534_v5 = vpack.c.bf16 %v127_v0, %v126_v63 }
  0x64   :  { %1547 = vmatprep.subr.bf16.mxu1 %v1546_v6  ;;  %1320 = vmatprep.mubr.f32.mxu0 %v1776_v7  ;;  %v1566_v6 = vpack.c.bf16 %v159_v2, %v158_v1 }
  0x65   :  { %1360 = vmatprep.mubr.f32.mxu1 %v1776_v7  ;;  %1321 = vmatmul.mubr.f32.gmra.mrb[6].mxu0 %v1776_v7 }
  0x66   :  { %1361 = vmatmul.mubr.f32.gmra.mrb[6].mxu1 %v1776_v7  ;;  %1394 = vmatprep.mubr.f32.mxu0 %v1738_v46 }
  0x67   :  { %1434 = vmatprep.mubr.f32.mxu1 %v1738_v46 }
  0x6a   :  { %1517 = vmatpush3.bf16.xpose.msra.mxu0 %v1516_v16 }
  0x6b   :  { %1549 = vmatpush3.bf16.xpose.msra.mxu1 %v1548_v17  ;;  %1519 = vmatprep.subr.bf16.mxu0 %v1518_v18 }
  0x6c   :  { %1551 = vmatprep.subr.bf16.mxu1 %v1550_v19 }
  0x72   :  { %1521 = vmatpush3.bf16.xpose.msra.mxu0 %v1520_v28 }
  0x73   :  { %1553 = vmatpush3.bf16.xpose.msra.mxu1 %v1552_v29  ;;  %1523 = vmatprep.subr.bf16.mxu0 %v1522_v30 }
  0x74   :  { %1555 = vmatprep.subr.bf16.mxu1 %v1554_v31 }
  0x7a   :  { %1525 = vmatpush3.bf16.xpose.msra.mxu0 %v1524_v40 }
  0x7b   :  { %1557 = vmatpush3.bf16.xpose.msra.mxu1 %v1556_v41  ;;  %1527 = vmatprep.subr.bf16.mxu0 %v1526_v42 }
  0x7c   :  { %1559 = vmatprep.subr.bf16.mxu1 %v1558_v43 }
  0x82   :  { %1529 = vmatpush3.bf16.xpose.msra.mxu0 %v1528_v53 }
  0x83   :  { %1561 = vmatpush3.bf16.xpose.msra.mxu1 %v1560_v54  ;;  %1531 = vmatprep.subr.bf16.mxu0 %v1530_v55 }
  0x84   :  { %1563 = vmatprep.subr.bf16.mxu1 %v1562_v56 }
  0x8a   :  { %1533 = vmatpush3.bf16.xpose.msra.mxu0 %v1532_v3 }
  0x8b   :  { %1565 = vmatpush3.bf16.xpose.msra.mxu1 %v1564_v4  ;;  %1535 = vmatprep.subr.bf16.mxu0 %v1534_v5 }
  0x8c   :  { %1567 = vmatprep.subr.bf16.mxu1 %v1566_v6 }
  0x92   :  { %1537 = vmatpush3.bf16.xpose.msra.mxu0 %v1536_v12 }
  0x93   :  { %1569 = vmatpush3.bf16.xpose.msra.mxu1 %v1568_v13 }
  0x99   :  { %1395 = vmatmul.mubr.f32.vlgmr.msra.gmra.mrb[8].mxu0 %v1738_v46 }
  0x9a   :  { %1435 = vmatmul.mubr.f32.vlgmr.msra.gmra.mrb[8].mxu1 %v1738_v46  ;;  %1396 = vmatprep.mubr.f32.mxu0 %v1758_v57  ;;  %v522_v46 = vlaneseq }
  0x9b   :  { %1436 = vmatprep.mubr.f32.mxu1 %v1758_v57 }
  0x9c   :  { %v1799_v14 = vshrl.u32 %v522_v46, 7  ;;  %v1835_v30 = vand.u32 127, %v522_v46 }
  0x9d   :  { %1397 = vmatmul.mubr.f32.gmra.mrb[10].mxu0 %v1758_v57 }
  0x9e   :  { %1437 = vmatmul.mubr.f32.gmra.mrb[10].mxu1 %v1758_v57  ;;  %1398 = vmatprep.mubr.f32.mxu0 %v1764_v61  ;;  %v524_v57 = vsub.s32 0, %v1799_v14  ;;  %v528_v16 = vsub.s32 1, %v1799_v14  ;;  %v536_v19 = vsub.s32 3, %v1799_v14  ;;  %v540_v34 = vsub.s32 4, %v1799_v14 }
  0x9f   :  { %1438 = vmatprep.mubr.f32.mxu1 %v1764_v61  ;;  %v548_v41 = vsub.s32 6, %v1799_v14  ;;  %v1854_v42 = vadd.s32 128, %v1835_v30  ;;  %v1857_v43 = vadd.s32 256, %v1835_v30  ;;  %v1864_v48 = vadd.s32 384, %v1835_v30 }
  0xa0   :  { %v1810_v17 = vrot.slane %v1805_v15, %v524_v57  ;;  %v1829_v27 = vrot.slane %v1805_v15, %v536_v19  ;;  %v1867_v50 = vrot.slane %v1805_v15, %v540_v34  ;;  %v544_v54 = vsub.s32 5, %v1799_v14 }
  0xa1   :  { %1399 = vmatmul.mubr.f32.gmra.mrb[12].mxu0 %v1764_v61  ;;  %v1890_v60 = vrot.slane %v1805_v15, %v548_v41  ;;  %v552_v9 = vsub.s32 7, %v1799_v14 }
  0xa2   :  { %1439 = vmatmul.mubr.f32.gmra.mrb[12].mxu1 %v1764_v61  ;;  %1400 = vmatprep.mubr.f32.mxu0 %v1776_v7  ;;  %v532_v61 = vsub.s32 2, %v1799_v14 }
  0xa3   :  { %1440 = vmatprep.mubr.f32.mxu1 %v1776_v7 }
  0xa4   :  { %v1813_v18 = vrot.slane %v1805_v15, %v532_v61 }
  0xa5   :  { %1401 = vmatmul.mubr.f32.gmra.mrb[14].mxu0 %v1776_v7 }
  0xa6   :  { %1441 = vmatmul.mubr.f32.gmra.mrb[14].mxu1 %v1776_v7  ;;  %v1816_v7 = vrot.slane %v1805_v15, %v528_v16 }
  0xa7   :  { %v1897_v0 = vpop.permute.xlu0 %1094 }
  0xa8   :  { %vm1105_vm4 = vcmp.eq.s32.totalorder %v1835_v30, %v1897_v0  ;;  %vm1107_vm8 = vcmp.eq.s32.totalorder %v1857_v43, %v1897_v0  ;;  %vm1106_vm12 = vcmp.eq.s32.totalorder %v1854_v42, %v1897_v0  ;;  %vm1108_vm15 = vcmp.eq.s32.totalorder %v1864_v48, %v1897_v0 }
 0x12c   :  { %v230_v20 = vpop.f32.mrb[0].mxu0 }
 0x12d   :  { %v1820_v21 = vmul.f32 %v1810_v17, %v230_v20  ;;  %v319_v22 = vpop.f32.mrb[0].mxu1  ;;  %v232_v23 = vpop.f32.mrb[1].mxu0 }
 0x12e   :  { %v1823_v24 = vmul.f32 %v1813_v18, %v319_v22  ;;  %v1826_v25 = vmul.f32 %v1816_v7, %v232_v23  ;;  %v321_v26 = vpop.f32.mrb[1].mxu1 }
 0x12f   :  { %v594_v28 = vmul.f32 %v1820_v21, %v1820_v21  ;;  %v1845_v36 = vmul.f32 %v1829_v27, %v321_v26  ;;  %v1870_v51 = vmul.f32 0.9553365, %v1820_v21  ;;  %v1873_v52 = vadd.f32 -0.08865606, %v1820_v21 }
 0x130   :  { %v596_v29 = vmul.f32 %v1823_v24, %v1823_v24  ;;  %v595_v32 = vmul.f32 %v1826_v25, %v1826_v25  ;;  %v236_v33 = vpop.f32.mrb[2].mxu0  ;;  %v1879_v55 = vmul.f32 0.9553365, %v1823_v24  ;;  %v1882_v56 = vadd.f32 -0.08865606, %v1823_v24 }
 0x131   :  { %v1837_v31 = vsub.f32 1.0, %v594_v28  ;;  %v1848_v37 = vmul.f32 %v1810_v17, %v236_v33  ;;  %v325_v38 = vpop.f32.mrb[2].mxu1  ;;  %v238_v39 = vpop.f32.mrb[3].mxu0  ;;  %v597_v47 = vmul.f32 %v1845_v36, %v1845_v36  ;;  %v1893_v62 = vmul.f32 0.9553365, %v1826_v25 }
 0x132   :  { %v1842_v35 = vsub.f32 1.0, %v596_v29  ;;  %v327_v40 = vpop.f32.mrb[3].mxu1  ;;  %v1859_v45 = vsub.f32 1.0, %v595_v32  ;;  %v1902_v2 = vmul.f32 %v1813_v18, %v325_v38  ;;  %v1908_v4 = vadd.f32 -0.08865606, %v1826_v25 }
 0x133   :  { %1579 = vrsqrt.f32 %v1837_v31  ;;  %v602_v53 = vmul.f32 %v1848_v37, %v1848_v37  ;;  %v1895_v63 = vsub.f32 1.0, %v597_v47  ;;  %vm660_vm0 = vcmp.eq.f32.partialorder %v1837_v31, inf }
 0x134   :  { %1581 = vrsqrt.f32 %v1842_v35  ;;  %v242_v44 = vpop.f32.mrb[4].mxu0  ;;  %v1911_v5 = vmul.f32 %v1816_v7, %v238_v39  ;;  %vm662_vm1 = vcmp.eq.f32.partialorder %v1837_v31, 0.0  ;;  %v663_v10 = vand.u32 2147483648, %v1837_v31 }
 0x135   :  { %v331_v49 = vpop.f32.mrb[4].mxu1  ;;  %1583 = vrsqrt.f32 %v1859_v45  ;;  %v1885_v58 = vpop.f32.mrb[5].mxu0  ;;  %v1899_v1 = vsub.f32 1.0, %v602_v53  ;;  %vm674_vm2 = vcmp.eq.f32.partialorder %v1842_v35, inf  ;;  %vm676_vm3 = vcmp.eq.f32.partialorder %v1842_v35, 0.0 }
 0x136   :  { %v1887_v59 = vpop.f32.mrb[5].mxu1  ;;  %1585 = vrsqrt.f32 %v1895_v63  ;;  %v677_v12 = vand.u32 2147483648, %v1842_v35  ;;  %v1928_v13 = vmul.f32 %v1829_v27, %v327_v40  ;;  %v1931_v46 = vmul.f32 0.9553365, %v1845_v36 }
 0x137   :  { %1587 = vrsqrt.f32 %v1899_v1  ;;  %v1934_v57 = vadd.f32 -0.08865606, %v1845_v36  ;;  %v1939_v61 = vmul.f32 0.9553365, %v1848_v37  ;;  %v604_v16 = vmul.f32 %v1902_v2, %v1902_v2 }
 0x138   :  { %v1904_v3 = vpop.f32.mrb[6].mxu0  ;;  %vm978_vm5 = vcmp.gt.f32.partialorder %v1820_v21, -0.9553365  ;;  %vm667_vm6 = vcmp.eq.f32.partialorder %v1859_v45, inf  ;;  %vm669_vm7 = vcmp.eq.f32.partialorder %v1859_v45, 0.0  ;;  %v670_v20 = vand.u32 2147483648, %v1859_v45 }
 0x139   :  { %v1913_v6 = vpop.f32.mrb[6].mxu1  ;;  %v1915_v8 = vpop.f32.mrb[7].mxu0  ;;  %v603_v22 = vmul.f32 %v1911_v5, %v1911_v5  ;;  %vm980_vm9 = vcmp.gt.f32.partialorder %v1823_v24, -0.9553365  ;;  %v1954_v28 = vadd.f32 -0.08865606, %v1848_v37  ;;  %v1959_v32 = vmul.f32 %v1810_v17, %v242_v44 }
 0x13a   :  { %v1922_v11 = vpop.f32.mrb[7].mxu1  ;;  %v1956_v29 = vsub.f32 1.0, %v604_v16  ;;  %v605_v38 = vmul.f32 %v1928_v13, %v1928_v13  ;;  %v1967_v39 = vmul.f32 %v1813_v18, %v331_v49  ;;  %vm681_vm10 = vcmp.eq.f32.partialorder %v1895_v63, inf }
 0x13b   :  { %v1962_v34 = vsub.f32 1.0, %v603_v22  ;;  %vm683_vm11 = vcmp.eq.f32.partialorder %v1895_v63, 0.0  ;;  %vm979_vm13 = vcmp.gt.f32.partialorder %v1826_v25, -0.9553365  ;;  %v684_v49 = vand.u32 2147483648, %v1895_v63 }
 0x13c   :  { %1589 = vrsqrt.f32 %v1956_v29  ;;  %vm716_vm14 = vcmp.eq.f32.partialorder %v1899_v1, inf  ;;  %v1993_v22 = vsub.f32 1.0, %v605_v38 }
 0x13d   :  { %v1580_v19 = vpop.eup %1579  ;;  %1591 = vrsqrt.f32 %v1962_v34 }
 0x13e   :  { %v1582_v23 = vpop.eup %1581  ;;  %v659_v26 = vmul.f32 %v1580_v19, %v1837_v31  ;;  %1593 = vrsqrt.f32 %v1993_v22 }
 0x13f   :  { %v673_v33 = vmul.f32 %v1582_v23, %v1842_v35  ;;  %v1584_v41 = vpop.eup %1583 }
 0x140   :  { %v661_v40 = vsel %vm660_vm0, %v1837_v31, %v659_v26  ;;  %v666_v19 = vmul.f32 %v1584_v41, %v1859_v45  ;;  %vm718_vm0 = vcmp.eq.f32.partialorder %v1899_v1, 0.0  ;;  %v1586_v23 = vpop.eup %1585 }
 0x141   :  { %v664_v44 = vsel %vm662_vm1, %v663_v10, %v661_v40  ;;  %v675_v47 = vsel %vm674_vm2, %v1842_v35, %v673_v33  ;;  %v719_v10 = vand.u32 2147483648, %v1899_v1  ;;  %vm981_vm1 = vcmp.gt.f32.partialorder %v1845_v36, -0.9553365  ;;  %v1588_v33 = vpop.eup %1587 }
 0x142   :  { %v914_v53 = vmul.f32 0.29552022, %v664_v44  ;;  %v678_v16 = vsel %vm676_vm3, %v677_v12, %v675_v47  ;;  %v668_v35 = vsel %vm667_vm6, %v1859_v45, %v666_v19  ;;  %vm730_vm2 = vcmp.eq.f32.partialorder %v1956_v29, inf }
 0x143   :  { %v916_v31 = vmul.f32 0.29552022, %v678_v16  ;;  %v2002_v12 = vmul.f32 0.9553365, %v1902_v2  ;;  %v671_v38 = vsel %vm669_vm7, %v670_v20, %v668_v35  ;;  %v680_v41 = vmul.f32 %v1586_v23, %v1895_v63 }
 0x144   :  { %v946_v26 = vsub.f32 %v1870_v51, %v914_v53  ;;  %v915_v44 = vmul.f32 0.29552022, %v671_v38  ;;  %v715_v47 = vmul.f32 %v1588_v33, %v1899_v1  ;;  %v610_v53 = vmul.f32 %v1959_v32, %v1959_v32 }
 0x145   :  { %v948_v40 = vsub.f32 %v1879_v55, %v916_v31  ;;  %v682_v45 = vsel %vm681_vm10, %v1895_v63, %v680_v41  ;;  %vm732_vm3 = vcmp.eq.f32.partialorder %v1956_v29, 0.0  ;;  %v726_v63 = vand.u32 2147483648, %v1962_v34 }
 0x146   :  { %v1042_v51 = vsel %vm978_vm5, %v946_v26, %v1873_v52  ;;  %v947_v52 = vsub.f32 %v1893_v62, %v915_v44  ;;  %v685_v16 = vsel %vm683_vm11, %v684_v49, %v682_v45  ;;  %v717_v26 = vsel %vm716_vm14, %v1899_v1, %v715_v47  ;;  %v1590_v35 = vpop.eup %1589 }
 0x147   :  { %v1044_v55 = vsel %vm980_vm9, %v948_v40, %v1882_v56  ;;  %v1137_v20 = vsel %vm1105_vm4, %v1042_v51, %v1820_v21  ;;  %v917_v31 = vmul.f32 0.29552022, %v685_v16  ;;  %v733_v21 = vand.u32 2147483648, %v1956_v29  ;;  %v1592_v49 = vpop.eup %1591 }
 0x148   :  { %v1139_v56 = vsel %vm1107_vm8, %v1044_v55, %v1823_v24  ;;  %v1169_v19 = vmul.f32 30.0, %v1137_v20  ;;  %v1043_v62 = vsel %vm979_vm13, %v947_v52, %v1908_v4  ;;  %vm723_vm4 = vcmp.eq.f32.partialorder %v1962_v34, inf  ;;  %v1594_v55 = vpop.eup %1593 }
 0x149   :  { %v1171_v23 = vmul.f32 30.0, %v1139_v56  ;;  %v2042_v24 = vsub.f32 1.0, %v610_v53  ;;  %v949_v33 = vsub.f32 %v1931_v46, %v917_v31  ;;  %v1138_v40 = vsel %vm1106_vm12, %v1043_v62, %v1826_v25 }
 0x14a   :  { %1201 = vst [vmem:[#allocation5] sm:$0xff] %v1169_v19  ;;  %v720_v38 = vsel %vm718_vm0, %v719_v10, %v717_v26  ;;  %vm986_vm5 = vcmp.gt.f32.partialorder %v1848_v37, -0.9553365  ;;  %v729_v4 = vmul.f32 %v1590_v35, %v1956_v29  ;;  %v1170_v41 = vmul.f32 30.0, %v1138_v40 }
 0x14b   :  { %1203 = vst [vmem:[#allocation5 + $0x10] sm:$0xff] %v1171_v23  ;;  %v722_v51 = vmul.f32 %v1592_v49, %v1962_v34  ;;  %vm725_vm6 = vcmp.eq.f32.partialorder %v1962_v34, 0.0  ;;  %1595 = vrsqrt.f32 %v2042_v24  ;;  %v1045_v46 = vsel %vm981_vm1, %v949_v33, %v1934_v57 }
 0x14c   :  { %v731_v25 = vsel %vm730_vm2, %v1956_v29, %v729_v4  ;;  %v1260_v1 = vadd.f32 -0.08865606, %v1902_v2  ;;  %v891_v10 = vmul.f32 0.9553365, %v1911_v5  ;;  %v1140_v44 = vsel %vm1108_vm15, %v1045_v46, %v1845_v36  ;;  %1202 = vst [vmem:[#allocation5 + $0x8] sm:$0xff] %v1170_v41 }
 0x14d   :  { %v922_v47 = vmul.f32 0.29552022, %v720_v38  ;;  %v734_v53 = vsel %vm732_vm3, %v733_v21, %v731_v25  ;;  %vm988_vm7 = vcmp.gt.f32.partialorder %v1902_v2, -0.9553365  ;;  %v724_v57 = vsel %vm723_vm4, %v1962_v34, %v722_v51 }
 0x14e   :  { %vm987_vm8 = vcmp.gt.f32.partialorder %v1911_v5, -0.9553365  ;;  %v1172_v45 = vmul.f32 30.0, %v1140_v44  ;;  %v727_v20 = vsel %vm725_vm6, %v726_v63, %v724_v57  ;;  %vm737_vm9 = vcmp.eq.f32.partialorder %v1993_v22, inf }
 0x14f   :  { %v740_v36 = vand.u32 2147483648, %v1993_v22  ;;  %v1259_v52 = vadd.f32 -0.08865606, %v1911_v5  ;;  %v736_v29 = vmul.f32 %v1594_v55, %v1993_v22  ;;  %vm739_vm10 = vcmp.eq.f32.partialorder %v1993_v22, 0.0 }
 0x150   :  { %v612_v16 = vmul.f32 %v1967_v39, %v1967_v39  ;;  %1204 = vst [vmem:[#allocation5 + $0x18] sm:$0xff] %v1172_v45  ;;  %v924_v34 = vmul.f32 0.29552022, %v734_v53  ;;  %v923_v56 = vmul.f32 0.29552022, %v727_v20  ;;  %v2086_v31 = vrot.slane %v1805_v15, %v544_v54 }
 0x151   :  { %v893_v19 = vmul.f32 0.9553365, %v1928_v13  ;;  %v954_v23 = vsub.f32 %v1939_v61, %v922_v47  ;;  %v738_v26 = vsel %vm737_vm9, %v1993_v22, %v736_v29  ;;  %v2094_v35 = vmul.f32 %v1816_v7, %v1885_v58 }
 0x152   :  { %v2090_v21 = vsub.f32 1.0, %v612_v16  ;;  %v741_v62 = vsel %vm739_vm10, %v740_v36, %v738_v26  ;;  %vm989_vm11 = vcmp.gt.f32.partialorder %v1928_v13, -0.9553365  ;;  %v1261_v63 = vadd.f32 -0.08865606, %v1928_v13 }
 0x153   :  { %v2100_v49 = vmul.f32 %v1829_v27, %v1887_v59  ;;  %v925_v54 = vmul.f32 0.29552022, %v741_v62  ;;  %v2103_v61 = vmul.f32 0.9553365, %v1959_v32  ;;  %v2108_v22 = vmul.f32 %v1810_v17, %v1904_v3  ;;  %v2123_v3 = vpop.permute.xlu0 %1097 }
 0x154   :  { %1597 = vrsqrt.f32 %v2090_v21  ;;  %v956_v58 = vsub.f32 %v2002_v12, %v924_v34  ;;  %v955_v33 = vsub.f32 %v891_v10, %v923_v56  ;;  %vm772_vm12 = vcmp.eq.f32.partialorder %v2042_v24, inf  ;;  %v2187_v56 = vpop.permute.xlu1 %1100 }
 0x155   :  { %v611_v40 = vmul.f32 %v2094_v35, %v2094_v35  ;;  %v1596_v59 = vpop.eup %1595  ;;  %v2117_v38 = vsel %vm986_vm5, %v954_v23, %v1954_v28  ;;  %vm774_vm13 = vcmp.eq.f32.partialorder %v2042_v24, 0.0  ;;  %v775_v4 = vand.u32 2147483648, %v2042_v24 }
 0x156   :  { %v613_v17 = vmul.f32 %v2100_v49, %v2100_v49  ;;  %v771_v12 = vmul.f32 %v1596_v59, %v2042_v24  ;;  %v1266_v41 = vadd.f32 -0.08865606, %v1959_v32  ;;  %v2128_v51 = vmul.f32 0.9553365, %v1967_v39 }
 0x157   :  { %v2130_v46 = vsub.f32 1.0, %v611_v40  ;;  %v957_v28 = vsub.f32 %v893_v19, %v925_v54  ;;  %vm994_vm14 = vcmp.gt.f32.partialorder %v1959_v32, -0.9553365  ;;  %v2134_v25 = vadd.f32 -0.08865606, %v1967_v39 }
 0x158   :  { %v2136_v10 = vsub.f32 1.0, %v613_v17  ;;  %v618_v44 = vmul.f32 %v2108_v22, %v2108_v22  ;;  %v2142_v47 = vsel %vm988_vm7, %v956_v58, %v1260_v1  ;;  %v2146_v53 = vsel %vm987_vm8, %v955_v33, %v1259_v52 }
 0x159   :  { %v773_v57 = vsel %vm772_vm12, %v2042_v24, %v771_v12  ;;  %1599 = vrsqrt.f32 %v2130_v46  ;;  %vm1113_vm15 = vcmp.eq.s32.totalorder %v1835_v30, %v2123_v3  ;;  %vm1114_vm0 = vcmp.eq.s32.totalorder %v1854_v42, %v2123_v3 }
 0x15a   :  { %v776_v1 = vsel %vm774_vm13, %v775_v4, %v773_v57  ;;  %vm786_vm1 = vcmp.eq.f32.partialorder %v2090_v21, inf  ;;  %vm788_vm2 = vcmp.eq.f32.partialorder %v2090_v21, 0.0  ;;  %1601 = vrsqrt.f32 %v2136_v10 }
 0x15b   :  { %v930_v55 = vmul.f32 0.29552022, %v776_v1  ;;  %v789_v45 = vand.u32 2147483648, %v2090_v21  ;;  %v2163_v20 = vmul.f32 0.9553365, %v2094_v35  ;;  %v2165_v36 = vsub.f32 1.0, %v618_v44 }
 0x15c   :  { %v2169_v52 = vsel %vm989_vm11, %v957_v28, %v1261_v63  ;;  %v2172_v24 = vadd.f32 -0.08865606, %v2094_v35  ;;  %v2175_v29 = vmul.f32 0.9553365, %v2100_v49  ;;  %v2179_v16 = vmul.f32 %v1813_v18, %v1913_v6  ;;  %v2249_v28 = vpop.permute.xlu1 %1103 }
 0x15d   :  { %vm779_vm3 = vcmp.eq.f32.partialorder %v2130_v46, inf  ;;  %vm781_vm4 = vcmp.eq.f32.partialorder %v2130_v46, 0.0  ;;  %v2184_v34 = vadd.f32 -0.08865606, %v2100_v49  ;;  %1603 = vrsqrt.f32 %v2165_v36 }
 0x15e   :  { %v1598_v19 = vpop.eup %1597  ;;  %vm996_vm5 = vcmp.gt.f32.partialorder %v1967_v39, -0.9553365  ;;  %v782_v23 = vand.u32 2147483648, %v2130_v46  ;;  %vm793_vm6 = vcmp.eq.f32.partialorder %v2136_v10, inf  ;;  %vm795_vm7 = vcmp.eq.f32.partialorder %v2136_v10, 0.0 }
 0x15f   :  { %v620_v18 = vmul.f32 %v2179_v16, %v2179_v16  ;;  %v962_v6 = vsub.f32 %v2103_v61, %v930_v55  ;;  %v785_v26 = vmul.f32 %v1598_v19, %v2090_v21  ;;  %v796_v62 = vand.u32 2147483648, %v2136_v10 }
 0x160   :  { %v2200_v63 = vmul.f32 %v1816_v7, %v1915_v8  ;;  %vm1115_vm8 = vcmp.eq.s32.totalorder %v1857_v43, %v2123_v3  ;;  %vm1116_vm9 = vcmp.eq.s32.totalorder %v1864_v48, %v2123_v3  ;;  %v2207_v54 = vmul.f32 0.9553365, %v2108_v22 }
 0x161   :  { %v2210_v58 = vadd.f32 -0.08865606, %v2108_v22  ;;  %v2212_v61 = vsub.f32 1.0, %v620_v18  ;;  %v2216_v33 = vmul.f32 %v1829_v27, %v1922_v11  ;;  %v787_v7 = vsel %vm786_vm1, %v2090_v21, %v785_v26 }
 0x162   :  { %vm828_vm11 = vcmp.eq.f32.partialorder %v2165_v36, inf  ;;  %vm830_vm12 = vcmp.eq.f32.partialorder %v2165_v36, 0.0  ;;  %v619_v8 = vmul.f32 %v2200_v63, %v2200_v63  ;;  %v790_v40 = vsel %vm788_vm2, %v789_v45, %v787_v7 }
 0x163   :  { %v831_v27 = vand.u32 2147483648, %v2165_v36  ;;  %1605 = vrsqrt.f32 %v2212_v61  ;;  %v2232_v11 = vmul.f32 0.9553365, %v2179_v16  ;;  %vm1121_vm1 = vcmp.eq.s32.totalorder %v1835_v30, %v2187_v56  ;;  %v1600_v59 = vpop.eup %1599 }
 0x164   :  { %vm1122_vm10 = vcmp.eq.s32.totalorder %v1854_v42, %v2187_v56  ;;  %v1058_v21 = vsel %vm994_vm14, %v962_v6, %v1266_v41  ;;  %v932_v4 = vmul.f32 0.29552022, %v790_v40  ;;  %v2241_v17 = vadd.f32 -0.08865606, %v2179_v16  ;;  %v1602_v44 = vpop.eup %1601 }
 0x165   :  { %v2243_v12 = vsub.f32 1.0, %v619_v8  ;;  %vm1123_vm2 = vcmp.eq.s32.totalorder %v1857_v43, %v2187_v56  ;;  %v778_v57 = vmul.f32 %v1600_v59, %v2130_v46  ;;  %v621_v41 = vmul.f32 %v2216_v33, %v2216_v33 }
 0x166   :  { %v1145_v1 = vsel %vm1113_vm15, %v2117_v38, %v1848_v37  ;;  %v1146_v55 = vsel %vm1114_vm0, %v2146_v53, %v1911_v5  ;;  %v964_v45 = vsub.f32 %v2128_v51, %v932_v4  ;;  %v792_v19 = vmul.f32 %v1602_v44, %v2136_v10 }
 0x167   :  { %vm1002_vm14 = vcmp.gt.f32.partialorder %v2108_v22, -0.9553365  ;;  %1607 = vrsqrt.f32 %v2243_v12  ;;  %v2269_v18 = vmul.f32 0.9553365, %v2200_v63  ;;  %v780_v37 = vsel %vm779_vm3, %v2130_v46, %v778_v57  ;;  %v1604_v38 = vpop.eup %1603 }
 0x168   :  { %vm842_vm15 = vcmp.eq.f32.partialorder %v2212_v61, inf  ;;  %vm844_vm13 = vcmp.eq.f32.partialorder %v2212_v61, 0.0  ;;  %v2276_v5 = vsub.f32 1.0, %v621_v41  ;;  %vm1129_vm0 = vcmp.eq.s32.totalorder %v1835_v30, %v2249_v28 }
 0x169   :  { %v783_v51 = vsel %vm781_vm4, %v782_v23, %v780_v37  ;;  %v794_v53 = vsel %vm793_vm6, %v2136_v10, %v792_v19  ;;  %v845_v6 = vand.u32 2147483648, %v2212_v61  ;;  %vm835_vm3 = vcmp.eq.f32.partialorder %v2243_v12, inf }
 0x16a   :  { %v931_v26 = vmul.f32 0.29552022, %v783_v51  ;;  %v797_v7 = vsel %vm795_vm7, %v796_v62, %v794_v53  ;;  %v827_v8 = vmul.f32 %v1604_v38, %v2165_v36  ;;  %1609 = vrsqrt.f32 %v2276_v5 }
 0x16b   :  { %v1060_v46 = vsel %vm996_vm5, %v964_v45, %v2134_v25  ;;  %v933_v23 = vmul.f32 0.29552022, %v797_v7  ;;  %vm837_vm4 = vcmp.eq.f32.partialorder %v2243_v12, 0.0  ;;  %v838_v40 = vand.u32 2147483648, %v2243_v12 }
 0x16c   :  { %v963_v59 = vsub.f32 %v2163_v20, %v931_v26  ;;  %v829_v10 = vsel %vm828_vm11, %v2165_v36, %v827_v8  ;;  %vm1004_vm6 = vcmp.gt.f32.partialorder %v2179_v16, -0.9553365  ;;  %v1147_v62 = vsel %vm1115_vm8, %v2142_v47, %v1902_v2  ;;  %v408_v37 = vpop.f32.mrb[8].mxu0 }
 0x16d   :  { %v1148_v25 = vsel %vm1116_vm9, %v2169_v52, %v1928_v13  ;;  %v965_v20 = vsub.f32 %v2175_v29, %v933_v23  ;;  %v832_v4 = vsel %vm830_vm12, %v831_v27, %v829_v10  ;;  %v1177_v44 = vmul.f32 30.0, %v1145_v1  ;;  %v1606_v41 = vpop.eup %1605  ;;  %v497_v29 = vpop.f32.mrb[8].mxu1 }
 0x16e   :  { %v1178_v57 = vmul.f32 30.0, %v1146_v55  ;;  %vm1131_vm5 = vcmp.eq.s32.totalorder %v1857_v43, %v2249_v28  ;;  %vm2821_vm7 = vcmp.gt.f32.partialorder %v2094_v35, -0.9553365  ;;  %v938_v47 = vmul.f32 0.29552022, %v832_v4  ;;  %v410_v27 = vpop.f32.mrb[9].mxu0 }
 0x16f   :  { %v1059_v2 = vsel %vm2821_vm7, %v963_v59, %v2172_v24  ;;  %v1179_v45 = vmul.f32 30.0, %v1147_v62  ;;  %v1180_v19 = vmul.f32 30.0, %v1148_v25  ;;  %vm2822_vm8 = vcmp.gt.f32.partialorder %v2100_v49, -0.9553365  ;;  %1209 = vst [vmem:[#allocation5 + $0x40] sm:$0xff] %v1177_v44 }
 0x170   :  { %v1061_v13 = vsel %vm2822_vm8, %v965_v20, %v2184_v34  ;;  %v841_v36 = vmul.f32 %v1606_v41, %v2212_v61  ;;  %vm1003_vm9 = vcmp.gt.f32.partialorder %v2200_v63, -0.9553365  ;;  %1210 = vst [vmem:[#allocation5 + $0x48] sm:$0xff] %v1178_v57  ;;  %v1153_v52 = vsel %vm1121_vm1, %v1058_v21, %v1959_v32  ;;  %v414_v8 = vpop.f32.mrb[10].mxu0 }
 0x171   :  { %v1154_v24 = vsel %vm1122_vm10, %v1059_v2, %v2094_v35  ;;  %v970_v34 = vsub.f32 %v2207_v54, %v938_v47  ;;  %1211 = vst [vmem:[#allocation5 + $0x50] sm:$0xff] %v1179_v45  ;;  %1212 = vst [vmem:[#allocation5 + $0x58] sm:$0xff] %v1180_v19  ;;  %v1155_v1 = vsel %vm1123_vm2, %v1060_v46, %v1967_v39  ;;  %v1185_v21 = vmul.f32 30.0, %v1153_v52  ;;  %v2343_v35 = vpop.f32.mrb[9].mxu1  ;;  %v1608_v55 = vpop.eup %1607 }
 0x172   :  { %vm2823_vm11 = vcmp.eq.s32.totalorder %v1864_v48, %v2187_v56  ;;  %vm1130_vm10 = vcmp.eq.s32.totalorder %v1854_v42, %v2249_v28  ;;  %v843_v54 = vsel %vm842_vm15, %v2212_v61, %v841_v36  ;;  %v1186_v38 = vmul.f32 30.0, %v1154_v24  ;;  %v2367_v23 = vpop.f32.mrb[11].mxu0 }
 0x173   :  { %v1156_v32 = vsel %vm2823_vm11, %v1061_v13, %v2100_v49  ;;  %v1187_v51 = vmul.f32 30.0, %v1155_v1  ;;  %v1066_v39 = vsel %vm1002_vm14, %v970_v34, %v2210_v58  ;;  %v846_v49 = vsel %vm844_vm13, %v845_v6, %v843_v54  ;;  %1217 = vst [vmem:[#allocation5 + $0x80] sm:$0xff] %v1185_v21  ;;  %v2365_v6 = vpop.f32.mrb[10].mxu1 }
 0x174   :  { %v1188_v53 = vmul.f32 30.0, %v1156_v32  ;;  %v834_v26 = vmul.f32 %v1608_v55, %v2243_v12  ;;  %v2355_v7 = vmul.f32 %v1867_v50, %v408_v37  ;;  %v940_v46 = vmul.f32 0.29552022, %v846_v49  ;;  %1218 = vst [vmem:[#allocation5 + $0x88] sm:$0xff] %v1186_v38  ;;  %v1610_v59 = vpop.eup %1609  ;;  %v2375_v4 = vpop.f32.mrb[11].mxu1 }
 0x175   :  { %vm849_vm12 = vcmp.eq.f32.partialorder %v2276_v5, inf  ;;  %1219 = vst [vmem:[#allocation5 + $0x90] sm:$0xff] %v1187_v51  ;;  %v1161_v58 = vsel %vm1129_vm0, %v1066_v39, %v2108_v22  ;;  %v2363_v61 = vmul.f32 %v1890_v60, %v497_v29  ;;  %v852_v62 = vand.u32 2147483648, %v2276_v5  ;;  %v2387_v19 = vpop.f32.mrb[12].mxu0  ;;  %v2399_v13 = vpop.f32.mrb[12].mxu1 }
 0x176   :  { %1220 = vst [vmem:[#allocation5 + $0x98] sm:$0xff] %v1188_v53  ;;  %v836_v10 = vsel %vm835_vm3, %v2243_v12, %v834_v26  ;;  %v1193_v25 = vmul.f32 30.0, %v1161_v58  ;;  %v598_v20 = vmul.f32 %v2355_v7, %v2355_v7  ;;  %v972_v22 = vsub.f32 %v2232_v11, %v940_v46  ;;  %v2401_v36 = vpop.f32.mrb[13].mxu0 }
 0x177   :  { %v839_v44 = vsel %vm837_vm4, %v838_v40, %v836_v10  ;;  %v848_v57 = vmul.f32 %v1610_v59, %v2276_v5  ;;  %vm851_vm13 = vcmp.eq.f32.partialorder %v2276_v5, 0.0  ;;  %v1275_v2 = vadd.f32 -0.08865606, %v2200_v63 }
 0x178   :  { %v939_v41 = vmul.f32 0.29552022, %v839_v44  ;;  %1225 = vst [vmem:[#allocation5 + $0xc0] sm:$0xff] %v1193_v25  ;;  %v2383_v47 = vsub.f32 1.0, %v598_v20  ;;  %v600_v45 = vmul.f32 %v2363_v61, %v2363_v61  ;;  %v1068_v11 = vsel %vm1004_vm6, %v972_v22, %v2241_v17 }
 0x179   :  { %v850_v12 = vsel %vm849_vm12, %v2276_v5, %v848_v57  ;;  %v909_v40 = vmul.f32 0.9553365, %v2216_v33  ;;  %v2397_v37 = vmul.f32 %v2086_v31, %v410_v27  ;;  %v1163_v17 = vsel %vm1131_vm5, %v1068_v11, %v2179_v16  ;;  %v2409_v5 = vpop.f32.mrb[13].mxu1  ;;  %v2422_v16 = vpop.f32.mrb[14].mxu0 }
 0x17a   :  { %v971_v52 = vsub.f32 %v2269_v18, %v939_v41  ;;  %v853_v24 = vsel %vm851_vm13, %v852_v62, %v850_v12  ;;  %1611 = vrsqrt.f32 %v2383_v47  ;;  %v1277_v27 = vadd.f32 -0.08865606, %v2216_v33  ;;  %v2432_v54 = vpop.f32.mrb[14].mxu1  ;;  %v2434_v14 = vpop.f32.mrb[15].mxu0 }
 0x17b   :  { %v941_v29 = vmul.f32 0.29552022, %v853_v24  ;;  %v1195_v34 = vmul.f32 30.0, %v1163_v17  ;;  %vm1005_vm1 = vcmp.gt.f32.partialorder %v2216_v33, -0.9553365  ;;  %v2415_v18 = vsub.f32 1.0, %v600_v45 }
 0x17c   :  { %v1067_v1 = vsel %vm1003_vm9, %v971_v52, %v1275_v2  ;;  %v2420_v43 = vrot.slane %v1805_v15, %v552_v9  ;;  %vm1132_vm2 = vcmp.eq.s32.totalorder %v1864_v48, %v2249_v28  ;;  %v599_v55 = vmul.f32 %v2397_v37, %v2397_v37  ;;  %v2437_v9 = vpop.f32.mrb[15].mxu1 }
 0x17d   :  { %v973_v32 = vsub.f32 %v909_v40, %v941_v29  ;;  %v1162_v21 = vsel %vm1130_vm10, %v1067_v1, %v2200_v63  ;;  %1227 = vst [vmem:[#allocation5 + $0xd0] sm:$0xff] %v1195_v34  ;;  %1613 = vrsqrt.f32 %v2415_v18  ;;  %v2440_v48 = vadd.s32 512, %v1835_v30 }
 0x17e   :  { %v1194_v15 = vmul.f32 30.0, %v1162_v21  ;;  %v2442_v51 = vsub.f32 1.0, %v599_v55  ;;  %v2447_v63 = vmul.f32 %v2420_v43, %v2343_v35  ;;  %v2450_v53 = vmul.f32 %v1867_v50, %v414_v8 }
 0x17f   :  { %v1069_v38 = vsel %vm1005_vm1, %v973_v32, %v1277_v27  ;;  %v2454_v49 = vadd.s32 768, %v1835_v30  ;;  %v2457_v26 = vadd.s32 640, %v1835_v30  ;;  %v886_v46 = vmul.f32 0.9553365, %v2355_v7 }
 0x180   :  { %v1164_v42 = vsel %vm1132_vm2, %v1069_v38, %v2216_v33  ;;  %1226 = vst [vmem:[#allocation5 + $0xc8] sm:$0xff] %v1194_v15  ;;  %1615 = vrsqrt.f32 %v2442_v51  ;;  %v601_v33 = vmul.f32 %v2447_v63, %v2447_v63  ;;  %v1254_v35 = vadd.f32 -0.08865606, %v2355_v7 }
 0x181   :  { %v1196_v39 = vmul.f32 30.0, %v1164_v42  ;;  %vm1109_vm14 = vcmp.eq.s32.totalorder %v2440_v48, %v1897_v0  ;;  %v2466_v8 = vadd.s32 896, %v1835_v30  ;;  %v606_v58 = vmul.f32 %v2450_v53, %v2450_v53 }
 0x182   :  { %vm688_vm15 = vcmp.eq.f32.partialorder %v2383_v47, inf  ;;  %vm982_vm0 = vcmp.gt.f32.partialorder %v2355_v7, -0.9553365  ;;  %v2473_v10 = vmul.f32 0.9553365, %v2363_v61  ;;  %v2475_v62 = vsub.f32 1.0, %v601_v33 }
 0x183   :  { %1228 = vst [vmem:[#allocation5 + $0xd8] sm:$0xff] %v1196_v39  ;;  %v2479_v25 = vmul.f32 %v1890_v60, %v2365_v6  ;;  %vm690_vm3 = vcmp.eq.f32.partialorder %v2383_v47, 0.0  ;;  %v691_v20 = vand.u32 2147483648, %v2383_v47  ;;  %v2484_v22 = vsub.f32 1.0, %v606_v58 }
 0x184   :  { %v1612_v59 = vpop.eup %1611  ;;  %v1256_v44 = vadd.f32 -0.08865606, %v2363_v61  ;;  %v2488_v57 = vmul.f32 0.9553365, %v2397_v37  ;;  %1617 = vrsqrt.f32 %v2475_v62  ;;  %v2493_v41 = vmul.f32 %v2086_v31, %v2367_v23 }
 0x185   :  { %v687_v30 = vmul.f32 %v1612_v59, %v2383_v47  ;;  %vm702_vm4 = vcmp.eq.f32.partialorder %v2415_v18, inf  ;;  %vm1111_vm6 = vcmp.eq.s32.totalorder %v2454_v49, %v1897_v0  ;;  %1619 = vrsqrt.f32 %v2484_v22 }
 0x186   :  { %v2502_v2 = vmul.f32 %v2420_v43, %v2375_v4  ;;  %vm704_vm5 = vcmp.eq.f32.partialorder %v2415_v18, 0.0  ;;  %v705_v23 = vand.u32 2147483648, %v2415_v18  ;;  %vm984_vm7 = vcmp.gt.f32.partialorder %v2363_v61, -0.9553365 }
 0x187   :  { %v689_v6 = vsel %vm688_vm15, %v2383_v47, %v687_v30  ;;  %v1614_v45 = vpop.eup %1613  ;;  %v608_v47 = vmul.f32 %v2479_v25, %v2479_v25  ;;  %vm695_vm8 = vcmp.eq.f32.partialorder %v2442_v51, inf  ;;  %v1255_v52 = vadd.f32 -0.08865606, %v2397_v37 }
 0x188   :  { %v692_v11 = vsel %vm690_vm3, %v691_v20, %v689_v6  ;;  %v701_v40 = vmul.f32 %v1614_v45, %v2415_v18  ;;  %vm697_vm9 = vcmp.eq.f32.partialorder %v2442_v51, 0.0  ;;  %v698_v4 = vand.u32 2147483648, %v2442_v51 }
 0x189   :  { %v918_v12 = vmul.f32 0.29552022, %v692_v11  ;;  %vm1110_vm11 = vcmp.eq.s32.totalorder %v2457_v26, %v1897_v0  ;;  %v2516_v24 = vsub.f32 1.0, %v608_v47  ;;  %v607_v17 = vmul.f32 %v2493_v41, %v2493_v41 }
 0x18a   :  { %v1616_v29 = vpop.eup %1615  ;;  %v703_v34 = vsel %vm702_vm4, %v2415_v18, %v701_v40  ;;  %vm983_vm10 = vcmp.gt.f32.partialorder %v2397_v37, -0.9553365  ;;  %v2525_v1 = vmul.f32 0.9553365, %v2447_v63  ;;  %v609_v32 = vmul.f32 %v2502_v2, %v2502_v2 }
 0x18b   :  { %v950_v27 = vsub.f32 %v886_v46, %v918_v12  ;;  %v706_v21 = vsel %vm704_vm5, %v705_v23, %v703_v34  ;;  %v694_v55 = vmul.f32 %v1616_v29, %v2442_v51  ;;  %v2533_v15 = vadd.f32 -0.08865606, %v2447_v63 }
 0x18c   :  { %1621 = vrsqrt.f32 %v2516_v24  ;;  %v920_v42 = vmul.f32 0.29552022, %v706_v21  ;;  %v2539_v39 = vmul.f32 0.9553365, %v2450_v53  ;;  %v2542_v33 = vadd.f32 -0.08865606, %v2450_v53 }
 0x18d   :  { %v1046_v38 = vsel %vm982_vm0, %v950_v27, %v1254_v35  ;;  %v696_v46 = vsel %vm695_vm8, %v2442_v51, %v694_v55  ;;  %v2551_v58 = vsub.f32 1.0, %v607_v17  ;;  %v2553_v59 = vsub.f32 1.0, %v609_v32 }
 0x18e   :  { %v1141_v18 = vsel %vm1109_vm14, %v1046_v38, %v2355_v7  ;;  %v952_v30 = vsub.f32 %v2473_v10, %v920_v42  ;;  %v699_v20 = vsel %vm697_vm9, %v698_v4, %v696_v46  ;;  %vm1112_vm12 = vcmp.eq.s32.totalorder %v2466_v8, %v1897_v0  ;;  %v1618_v6 = vpop.eup %1617 }
 0x18f   :  { %v1173_v35 = vmul.f32 30.0, %v1141_v18  ;;  %v2562_v7 = vmul.f32 %v1867_v50, %v2387_v19  ;;  %v919_v45 = vmul.f32 0.29552022, %v699_v20  ;;  %vm709_vm13 = vcmp.eq.f32.partialorder %v2475_v62, inf  ;;  %v1620_v51 = vpop.eup %1619 }
 0x190   :  { %vm711_vm1 = vcmp.eq.f32.partialorder %v2475_v62, 0.0  ;;  %vm985_vm2 = vcmp.gt.f32.partialorder %v2447_v63, -0.9553365  ;;  %vm1117_vm14 = vcmp.eq.s32.totalorder %v2440_v48, %v2123_v3  ;;  %1623 = vrsqrt.f32 %v2551_v58 }
 0x191   :  { %1205 = vst [vmem:[#allocation5 + $0x20] sm:$0xff] %v1173_v35  ;;  %v1048_v10 = vsel %vm984_vm7, %v952_v30, %v1256_v44  ;;  %v708_v19 = vmul.f32 %v1618_v6, %v2475_v62  ;;  %v712_v11 = vand.u32 2147483648, %v2475_v62  ;;  %vm990_vm15 = vcmp.gt.f32.partialorder %v2450_v53, -0.9553365 }
 0x192   :  { %1625 = vrsqrt.f32 %v2553_v59  ;;  %v1143_v23 = vsel %vm1111_vm6, %v1048_v10, %v2363_v61  ;;  %v951_v47 = vsub.f32 %v2488_v57, %v919_v45  ;;  %v743_v12 = vmul.f32 %v1620_v51, %v2484_v22 }
 0x193   :  { %vm744_vm0 = vcmp.eq.f32.partialorder %v2484_v22, inf  ;;  %v1175_v44 = vmul.f32 30.0, %v1143_v23  ;;  %v710_v40 = vsel %vm709_vm13, %v2475_v62, %v708_v19  ;;  %vm746_vm3 = vcmp.eq.f32.partialorder %v2484_v22, 0.0 }
 0x194   :  { %v747_v4 = vand.u32 2147483648, %v2484_v22  ;;  %v1047_v17 = vsel %vm983_vm10, %v951_v47, %v1255_v52  ;;  %v713_v61 = vsel %vm711_vm1, %v712_v11, %v710_v40  ;;  %v745_v57 = vsel %vm744_vm0, %v2484_v22, %v743_v12 }
 0x195   :  { %v896_v29 = vmul.f32 0.9553365, %v2479_v25  ;;  %1207 = vst [vmem:[#allocation5 + $0x30] sm:$0xff] %v1175_v44  ;;  %v1142_v27 = vsel %vm1110_vm11, %v1047_v17, %v2397_v37  ;;  %v921_v34 = vmul.f32 0.29552022, %v713_v61  ;;  %vm1119_vm4 = vcmp.eq.s32.totalorder %v2454_v49, %v2123_v3 }
 0x196   :  { %v748_v32 = vsel %vm746_vm3, %v747_v4, %v745_v57  ;;  %v1264_v21 = vadd.f32 -0.08865606, %v2479_v25  ;;  %v1622_v52 = vpop.eup %1621  ;;  %v1174_v62 = vmul.f32 30.0, %v1142_v27  ;;  %vm758_vm6 = vcmp.eq.f32.partialorder %v2516_v24, inf }
 0x197   :  { %v926_v55 = vmul.f32 0.29552022, %v748_v32  ;;  %vm992_vm5 = vcmp.gt.f32.partialorder %v2479_v25, -0.9553365  ;;  %v614_v22 = vmul.f32 %v2562_v7, %v2562_v7  ;;  %v953_v38 = vsub.f32 %v2525_v1, %v921_v34 }
 0x198   :  { %v757_v37 = vmul.f32 %v1622_v52, %v2516_v24  ;;  %vm760_vm7 = vcmp.eq.f32.partialorder %v2516_v24, 0.0  ;;  %v761_v42 = vand.u32 2147483648, %v2516_v24  ;;  %1206 = vst [vmem:[#allocation5 + $0x28] sm:$0xff] %v1174_v62  ;;  %vm751_vm8 = vcmp.eq.f32.partialorder %v2551_v58, inf }
 0x199   :  { %v958_v18 = vsub.f32 %v2539_v39, %v926_v55  ;;  %vm753_vm9 = vcmp.eq.f32.partialorder %v2551_v58, 0.0  ;;  %v2612_v46 = vsub.f32 1.0, %v614_v22  ;;  %v1049_v35 = vsel %vm985_vm2, %v953_v38, %v2533_v15 }
 0x19a   :  { %v759_v1 = vsel %vm758_vm6, %v2516_v24, %v757_v37  ;;  %v754_v30 = vand.u32 2147483648, %v2551_v58  ;;  %vm1118_vm11 = vcmp.eq.s32.totalorder %v2457_v26, %v2123_v3  ;;  %v2623_v39 = vmul.f32 %v1890_v60, %v2399_v13  ;;  %v1624_v20 = vpop.eup %1623 }
 0x19b   :  { %v1144_v6 = vsel %vm1112_vm12, %v1049_v35, %v2447_v63  ;;  %v1054_v15 = vsel %vm990_vm15, %v958_v18, %v2542_v33  ;;  %v762_v24 = vsel %vm760_vm7, %v761_v42, %v759_v1  ;;  %vm1120_vm10 = vcmp.eq.s32.totalorder %v2466_v8, %v2123_v3 }
 0x19c   :  { %1627 = vrsqrt.f32 %v2612_v46  ;;  %v1626_v45 = vpop.eup %1625  ;;  %v1176_v51 = vmul.f32 30.0, %v1144_v6  ;;  %v1149_v13 = vsel %vm1117_vm14, %v1054_v15, %v2450_v53  ;;  %v928_v10 = vmul.f32 0.29552022, %v762_v24 }
 0x19d   :  { %v750_v0 = vmul.f32 %v1624_v20, %v2551_v58  ;;  %v1181_v63 = vmul.f32 30.0, %v1149_v13  ;;  %v764_v19 = vmul.f32 %v1626_v45, %v2553_v59  ;;  %vm765_vm12 = vcmp.eq.f32.partialorder %v2553_v59, inf }
 0x19e   :  { %v2644_v33 = vmul.f32 %v2086_v31, %v2401_v36  ;;  %1208 = vst [vmem:[#allocation5 + $0x38] sm:$0xff] %v1176_v51  ;;  %v960_v11 = vsub.f32 %v896_v29, %v928_v10  ;;  %v768_v53 = vand.u32 2147483648, %v2553_v59  ;;  %v616_v47 = vmul.f32 %v2623_v39, %v2623_v39 }
 0x19f   :  { %v752_v23 = vsel %vm751_vm8, %v2551_v58, %v750_v0  ;;  %1213 = vst [vmem:[#allocation5 + $0x60] sm:$0xff] %v1181_v63  ;;  %v895_v44 = vmul.f32 0.9553365, %v2493_v41  ;;  %v766_v36 = vsel %vm765_vm12, %v2553_v59, %v764_v19  ;;  %vm767_vm13 = vcmp.eq.f32.partialorder %v2553_v59, 0.0 }
 0x1a0   :  { %v755_v12 = vsel %vm753_vm9, %v754_v30, %v752_v23  ;;  %v1056_v40 = vsel %vm992_vm5, %v960_v11, %v1264_v21  ;;  %v769_v17 = vsel %vm767_vm13, %v768_v53, %v766_v36  ;;  %v648_v61 = vsub.f32 1.0, %v616_v47 }
 0x1a1   :  { %v927_v4 = vmul.f32 0.29552022, %v755_v12  ;;  %v1151_v57 = vsel %vm1119_vm4, %v1056_v40, %v2479_v25  ;;  %v897_v58 = vmul.f32 0.9553365, %v2502_v2  ;;  %v929_v29 = vmul.f32 0.29552022, %v769_v17 }
 0x1a2   :  { %v615_v27 = vmul.f32 %v2644_v33, %v2644_v33  ;;  %v1183_v34 = vmul.f32 30.0, %v1151_v57  ;;  %v1263_v59 = vadd.f32 -0.08865606, %v2493_v41  ;;  %1629 = vrsqrt.f32 %v648_v61 }
 0x1a3   :  { %v959_v32 = vsub.f32 %v895_v44, %v927_v4  ;;  %vm991_vm1 = vcmp.gt.f32.partialorder %v2493_v41, -0.9553365  ;;  %v961_v21 = vsub.f32 %v897_v58, %v929_v29  ;;  %v1265_v52 = vadd.f32 -0.08865606, %v2502_v2 }
 0x1a4   :  { %v647_v62 = vsub.f32 1.0, %v615_v27  ;;  %1215 = vst [vmem:[#allocation5 + $0x70] sm:$0xff] %v1183_v34  ;;  %vm993_vm2 = vcmp.gt.f32.partialorder %v2502_v2, -0.9553365  ;;  %vm800_vm14 = vcmp.eq.f32.partialorder %v2612_v46, inf  ;;  %v803_v1 = vand.u32 2147483648, %v2612_v46 }
 0x1a5   :  { %v1055_v55 = vsel %vm991_vm1, %v959_v32, %v1263_v59  ;;  %v1057_v38 = vsel %vm993_vm2, %v961_v21, %v1265_v52  ;;  %v2683_v30 = vmul.f32 %v2420_v43, %v2409_v5  ;;  %vm802_vm15 = vcmp.eq.f32.partialorder %v2612_v46, 0.0 }
 0x1a6   :  { %v1628_v25 = vpop.eup %1627  ;;  %v1150_v22 = vsel %vm1118_vm11, %v1055_v55, %v2493_v41  ;;  %1631 = vrsqrt.f32 %v647_v62  ;;  %v1152_v42 = vsel %vm1120_vm10, %v1057_v38, %v2502_v2  ;;  %v2689_v3 = vmul.f32 %v1867_v50, %v2422_v16 }
 0x1a7   :  { %v1182_v37 = vmul.f32 30.0, %v1150_v22  ;;  %v799_v18 = vmul.f32 %v1628_v25, %v2612_v46  ;;  %v1184_v35 = vmul.f32 30.0, %v1152_v42  ;;  %v2693_v2 = vmul.f32 %v1890_v60, %v2432_v54 }
 0x1a8   :  { %v617_v6 = vmul.f32 %v2683_v30, %v2683_v30  ;;  %v902_v5 = vmul.f32 0.9553365, %v2562_v7  ;;  %v622_v24 = vmul.f32 %v2689_v3, %v2689_v3  ;;  %vm1125_vm0 = vcmp.eq.s32.totalorder %v2440_v48, %v2187_v56 }
 0x1a9   :  { %1214 = vst [vmem:[#allocation5 + $0x68] sm:$0xff] %v1182_v37  ;;  %v801_v41 = vsel %vm800_vm14, %v2612_v46, %v799_v18  ;;  %1216 = vst [vmem:[#allocation5 + $0x78] sm:$0xff] %v1184_v35  ;;  %v1270_v60 = vadd.f32 -0.08865606, %v2562_v7  ;;  %v624_v45 = vmul.f32 %v2693_v2, %v2693_v2  ;;  %vm998_vm3 = vcmp.gt.f32.partialorder %v2562_v7, -0.9553365 }
 0x1aa   :  { %v804_v20 = vsel %vm802_vm15, %v803_v1, %v801_v41  ;;  %v2702_v50 = vsub.f32 1.0, %v617_v6  ;;  %v2705_v54 = vsub.f32 1.0, %v622_v24  ;;  %vm814_vm4 = vcmp.eq.f32.partialorder %v648_v61, inf }
 0x1ab   :  { %v934_v15 = vmul.f32 0.29552022, %v804_v20  ;;  %v817_v10 = vand.u32 2147483648, %v648_v61  ;;  %vm816_vm6 = vcmp.eq.f32.partialorder %v648_v61, 0.0  ;;  %v904_v11 = vmul.f32 0.9553365, %v2623_v39 }
 0x1ac   :  { %v1630_v16 = vpop.eup %1629  ;;  %1633 = vrsqrt.f32 %v2702_v50  ;;  %v2714_v12 = vsub.f32 1.0, %v624_v45  ;;  %vm807_vm5 = vcmp.eq.f32.partialorder %v647_v62, inf  ;;  %v810_v36 = vand.u32 2147483648, %v647_v62 }
 0x1ad   :  { %v966_v46 = vsub.f32 %v902_v5, %v934_v15  ;;  %v813_v51 = vmul.f32 %v1630_v16, %v648_v61  ;;  %1635 = vrsqrt.f32 %v2705_v54  ;;  %v2718_v40 = vmul.f32 %v2086_v31, %v2434_v14 }
 0x1ae   :  { %vm1127_vm7 = vcmp.eq.s32.totalorder %v2454_v49, %v2187_v56  ;;  %vm809_vm8 = vcmp.eq.f32.partialorder %v647_v62, 0.0  ;;  %1637 = vrsqrt.f32 %v2714_v12  ;;  %v1272_v17 = vadd.f32 -0.08865606, %v2623_v39 }
 0x1af   :  { %v1062_v13 = vsel %vm998_vm3, %v966_v46, %v1270_v60  ;;  %v815_v19 = vsel %vm814_vm4, %v648_v61, %v813_v51  ;;  %v623_v57 = vmul.f32 %v2718_v40, %v2718_v40  ;;  %vm1000_vm9 = vcmp.gt.f32.partialorder %v2623_v39, -0.9553365 }
 0x1b0   :  { %v1632_v0 = vpop.eup %1631  ;;  %v1157_v63 = vsel %vm1125_vm0, %v1062_v13, %v2562_v7  ;;  %v818_v53 = vsel %vm816_vm6, %v817_v10, %v815_v19  ;;  %v903_v31 = vmul.f32 0.9553365, %v2644_v33  ;;  %v2732_v27 = vmul.f32 %v2420_v43, %v2437_v9 }
 0x1b1   :  { %v1189_v23 = vmul.f32 30.0, %v1157_v63  ;;  %v806_v47 = vmul.f32 %v1632_v0, %v647_v62  ;;  %v936_v44 = vmul.f32 0.29552022, %v818_v53  ;;  %v2728_v29 = vsub.f32 1.0, %v623_v57 }
 0x1b2   :  { %v1271_v59 = vadd.f32 -0.08865606, %v2644_v33  ;;  %vm1126_vm11 = vcmp.eq.s32.totalorder %v2457_v26, %v2187_v56  ;;  %vm999_vm10 = vcmp.gt.f32.partialorder %v2644_v33, -0.9553365  ;;  %vm821_vm12 = vcmp.eq.f32.partialorder %v2702_v50, inf }
 0x1b3   :  { %1221 = vst [vmem:[#allocation5 + $0xa0] sm:$0xff] %v1189_v23  ;;  %v808_v7 = vsel %vm807_vm5, %v647_v62, %v806_v47  ;;  %v968_v4 = vsub.f32 %v904_v11, %v936_v44  ;;  %1639 = vrsqrt.f32 %v2728_v29  ;;  %vm823_vm13 = vcmp.eq.f32.partialorder %v2702_v50, 0.0 }
 0x1b4   :  { %v811_v61 = vsel %vm809_vm8, %v810_v36, %v808_v7  ;;  %v625_v9 = vmul.f32 %v2732_v27, %v2732_v27  ;;  %v824_v25 = vand.u32 2147483648, %v2702_v50  ;;  %vm856_vm1 = vcmp.eq.f32.partialorder %v2705_v54, inf }
 0x1b5   :  { %v935_v14 = vmul.f32 0.29552022, %v811_v61  ;;  %v1064_v58 = vsel %vm1000_vm9, %v968_v4, %v1272_v17  ;;  %v859_v42 = vand.u32 2147483648, %v2705_v54  ;;  %vm1128_vm2 = vcmp.eq.s32.totalorder %v2466_v8, %v2187_v56 }
 0x1b6   :  { %v1159_v34 = vsel %vm1127_vm7, %v1064_v58, %v2623_v39  ;;  %v1634_v21 = vpop.eup %1633  ;;  %v2751_v18 = vsub.f32 1.0, %v625_v9  ;;  %vm858_vm14 = vcmp.eq.f32.partialorder %v2705_v54, 0.0  ;;  %v905_v41 = vmul.f32 0.9553365, %v2683_v30 }
 0x1b7   :  { %v967_v32 = vsub.f32 %v903_v31, %v935_v14  ;;  %v1191_v52 = vmul.f32 30.0, %v1159_v34  ;;  %v1636_v62 = vpop.eup %1635  ;;  %v820_v43 = vmul.f32 %v1634_v21, %v2702_v50  ;;  %vm1001_vm15 = vcmp.gt.f32.partialorder %v2683_v30, -0.9553365 }
 0x1b8   :  { %v855_v22 = vmul.f32 %v1636_v62, %v2705_v54  ;;  %1641 = vrsqrt.f32 %v2751_v18  ;;  %v910_v5 = vmul.f32 0.9553365, %v2689_v3  ;;  %v1273_v16 = vadd.f32 -0.08865606, %v2683_v30 }
 0x1b9   :  { %v1063_v55 = vsel %vm999_vm10, %v967_v32, %v1271_v59  ;;  %1223 = vst [vmem:[#allocation5 + $0xb0] sm:$0xff] %v1191_v52  ;;  %v822_v37 = vsel %vm821_vm12, %v2702_v50, %v820_v43  ;;  %vm870_vm0 = vcmp.eq.f32.partialorder %v2714_v12, inf  ;;  %v873_v46 = vand.u32 2147483648, %v2714_v12 }
 0x1ba   :  { %v1158_v39 = vsel %vm1126_vm11, %v1063_v55, %v2644_v33  ;;  %v825_v35 = vsel %vm823_vm13, %v824_v25, %v822_v37  ;;  %v857_v1 = vsel %vm856_vm1, %v2705_v54, %v855_v22  ;;  %v1638_v33 = vpop.eup %1637  ;;  %v1278_v54 = vadd.f32 -0.08865606, %v2689_v3 }
 0x1bb   :  { %v1190_v38 = vmul.f32 30.0, %v1158_v39  ;;  %v937_v20 = vmul.f32 0.29552022, %v825_v35  ;;  %v860_v6 = vsel %vm858_vm14, %v859_v42, %v857_v1  ;;  %v869_v24 = vmul.f32 %v1638_v33, %v2714_v12 }
 0x1bc   :  { %v942_v15 = vmul.f32 0.29552022, %v860_v6  ;;  %vm872_vm3 = vcmp.eq.f32.partialorder %v2714_v12, 0.0  ;;  %vm1006_vm4 = vcmp.gt.f32.partialorder %v2689_v3, -0.9553365  ;;  %vm1133_vm6 = vcmp.eq.s32.totalorder %v2440_v48, %v2249_v28 }
 0x1bd   :  { %1222 = vst [vmem:[#allocation5 + $0xa8] sm:$0xff] %v1190_v38  ;;  %v969_v50 = vsub.f32 %v905_v41, %v937_v20  ;;  %v871_v45 = vsel %vm870_vm0, %v2714_v12, %v869_v24  ;;  %v1640_v10 = vpop.eup %1639  ;;  %v912_v19 = vmul.f32 0.9553365, %v2693_v2  ;;  %v1280_v47 = vadd.f32 -0.08865606, %v2693_v2 }
 0x1be   :  { %v974_v60 = vsub.f32 %v910_v5, %v942_v15  ;;  %v874_v13 = vsel %vm872_vm3, %v873_v46, %v871_v45  ;;  %v862_v12 = vmul.f32 %v1640_v10, %v2728_v29  ;;  %vm863_vm5 = vcmp.eq.f32.partialorder %v2728_v29, inf }
 0x1bf   :  { %v1065_v51 = vsel %vm1001_vm15, %v969_v50, %v1273_v16  ;;  %v944_v11 = vmul.f32 0.29552022, %v874_v13  ;;  %v866_v36 = vand.u32 2147483648, %v2728_v29  ;;  %vm1008_vm7 = vcmp.gt.f32.partialorder %v2693_v2, -0.9553365 }
 0x1c0   :  { %v1160_v0 = vsel %vm1128_vm2, %v1065_v51, %v2683_v30  ;;  %v1070_v63 = vsel %vm1006_vm4, %v974_v60, %v1278_v54  ;;  %v864_v56 = vsel %vm863_vm5, %v2728_v29, %v862_v12  ;;  %vm865_vm8 = vcmp.eq.f32.partialorder %v2728_v29, 0.0 }
 0x1c1   :  { %v1192_v23 = vmul.f32 30.0, %v1160_v0  ;;  %v1165_v53 = vsel %vm1133_vm6, %v1070_v63, %v2689_v3  ;;  %v976_v48 = vsub.f32 %v912_v19, %v944_v11  ;;  %vm1135_vm9 = vcmp.eq.s32.totalorder %v2454_v49, %v2249_v28 }
 0x1c2   :  { %v1197_v44 = vmul.f32 30.0, %v1165_v53  ;;  %v867_v3 = vsel %vm865_vm8, %v866_v36, %v864_v56  ;;  %v1642_v7 = vpop.eup %1641  ;;  %v911_v17 = vmul.f32 0.9553365, %v2718_v40  ;;  %v1279_v58 = vadd.f32 -0.08865606, %v2718_v40 }
 0x1c3   :  { %1224 = vst [vmem:[#allocation5 + $0xb8] sm:$0xff] %v1192_v23  ;;  %v1072_v30 = vsel %vm1008_vm7, %v976_v48, %v1280_v47  ;;  %v943_v61 = vmul.f32 0.29552022, %v867_v3  ;;  %v876_v31 = vmul.f32 %v1642_v7, %v2751_v18  ;;  %vm877_vm11 = vcmp.eq.f32.partialorder %v2751_v18, inf }
 0x1c4   :  { %1229 = vst [vmem:[#allocation5 + $0xe0] sm:$0xff] %v1197_v44  ;;  %v1167_v4 = vsel %vm1135_vm9, %v1072_v30, %v2693_v2  ;;  %v880_v29 = vand.u32 2147483648, %v2751_v18  ;;  %vm1007_vm10 = vcmp.gt.f32.partialorder %v2718_v40, -0.9553365  ;;  %vm879_vm12 = vcmp.eq.f32.partialorder %v2751_v18, 0.0 }
 0x1c5   :  { %v1199_v57 = vmul.f32 30.0, %v1167_v4  ;;  %v975_v14 = vsub.f32 %v911_v17, %v943_v61  ;;  %v878_v49 = vsel %vm877_vm11, %v2751_v18, %v876_v31  ;;  %vm1134_vm13 = vcmp.eq.s32.totalorder %v2457_v26, %v2249_v28 }
 0x1c6   :  { %v881_v34 = vsel %vm879_vm12, %v880_v29, %v878_v49  ;;  %v913_v59 = vmul.f32 0.9553365, %v2732_v27  ;;  %v1281_v55 = vadd.f32 -0.08865606, %v2732_v27  ;;  %vm1009_vm1 = vcmp.gt.f32.partialorder %v2732_v27, -0.9553365 }
 0x1c7   :  { %1231 = vst [vmem:[#allocation5 + $0xf0] sm:$0xff] %v1199_v57  ;;  %v1071_v2 = vsel %vm1007_vm10, %v975_v14, %v1279_v58  ;;  %v945_v21 = vmul.f32 0.29552022, %v881_v34  ;;  %vm1136_vm2 = vcmp.eq.s32.totalorder %v2466_v8, %v2249_v28 }
 0x1c8   :  { %v1166_v32 = vsel %vm1134_vm13, %v1071_v2, %v2718_v40 }
 0x1c9   :  { %v1198_v52 = vmul.f32 30.0, %v1166_v32  ;;  %v977_v62 = vsub.f32 %v913_v59, %v945_v21 }
 0x1cb   :  { %1230 = vst [vmem:[#allocation5 + $0xe8] sm:$0xff] %v1198_v52  ;;  %v1073_v43 = vsel %vm1009_vm1, %v977_v62, %v1281_v55 }
 0x1cc   :  { %v1168_v26 = vsel %vm1136_vm2, %v1073_v43, %v2732_v27 }
 0x1cd   :  { %v1200_v9 = vmul.f32 30.0, %v1168_v26 }
 0x1cf   :  { %1232 = vst [vmem:[#allocation5 + $0xf8] sm:$0xff] %v1200_v9 }
 0x1d0   :  { %1676 = shalt.err (!%p1673_p12)
}
 0x1d1   :  { %s1677_s23 = scalar_lea.hbm %s2820_s4, 4096 }
 0x1d2   :  { %p1678_p13 = scmp.ne.s32.totalorder %s2820_s4, %s1677_s23  ;;  %p1681_p0 = scmp.lt.u32.totalorder %s1677_s23, %s2820_s4 }
 0x1d4   :  { %p1683_p1 = pnand %p1681_p0, %p1678_p13 }
 0x1d6   :  { %1686 = shalt.err (!%p1683_p1)
}
 0x1d7   :  { %s1696_s28 = smov 1024   ;;  %s1697_s29 = smov 64  }
 0x1d8   :  { %1244 = dma.vmem_to_hbm [thread:$0]  %s1239_s19, 4096, %s2820_s4, [#allocation4], %s1696_s28, %s1696_s28, %s1697_s29  }
 0x1d9   :  { %1689 = dma.done.wait [#allocation4], 4096  }
 0x1da   :  { %1690 = vsyncadd [#allocation4], 4294963200 }
 0x1db   :  { %1248 = vsyncpa [#allocation3], 1 }
 0x1dc   :  { %1249 = vsyncpa [#allocation4], 1 }

</bundles_post_ra>
